<compile_context>
chip_gen: v6e
topology: v6e:2x2x1
jax: 0.10.0
libtpu: 0.0.40
codegen_flags: <defaults>
</compile_context>

<pallas_src>
import functools
import math

import jax
import jax.numpy as jnp
from jax.experimental import pallas as pl
from jax.experimental.pallas import tpu as pltpu

KSIZE = 5          # MoDEConv kernel_size
NUM_EXPERTS = 5    # architecture hard-codes 5 expert kernels


def _mode_layer(xb, tb, gw_ref, gb_ref, kb_ref, gamma_ref, beta_ref, cdt):
    """One MoDEConv layer on a block of TN samples (values stay in VMEM/vregs).

    xb: (TN, W, Cin) f32, tb: (TN, T) f32.
    gw_ref: (E, T, Co), gb_ref: (E, Co), kb_ref: (E, K*Cin, Co),
    gamma_ref/beta_ref: (1, Co).  Returns (TN, W, Co) f32.
    """
    TN, W, Cin = xb.shape
    E = gw_ref.shape[0]
    Co = gw_ref.shape[2]
    K = kb_ref.shape[1] // Cin

    # --- gate: per-sample linear over tasks, softmax over experts ------------
    logits = [jnp.dot(tb, gw_ref[e], preferred_element_type=jnp.float32)
              + gb_ref[e][None, :] for e in range(E)]            # E x (TN, Co)
    m = logits[0]
    for e in range(1, E):
        m = jnp.maximum(m, logits[e])
    egs = [jnp.exp(l - m) for l in logits]
    den = egs[0]
    for e in range(1, E):
        den = den + egs[e]
    inv = 1.0 / den                                              # (TN, Co)

    # --- routing: mix the expert kernel bank with per-(sample, out-chan) gates
    w = (egs[0] * inv)[:, None, :] * kb_ref[0][None, :, :]
    for e in range(1, E):
        w = w + (egs[e] * inv)[:, None, :] * kb_ref[e][None, :, :]
    # w: (TN, K*Cin, Co)

    # --- causal conv1d == one batched im2col matmul on the MXU ---------------
    # In-kernel causal left pad (K-1 zero rows) + im2col raises the MXU
    # contraction from Cin to K*Cin and replaces K separate matmuls.
    xpad = jnp.concatenate(
        [jnp.zeros((TN, K - 1, Cin), xb.dtype), xb], axis=1)     # (TN, W+K-1, Cin)
    patches = jnp.concatenate(
        [xpad[:, k:k + W, :] for k in range(K)], axis=2)         # (TN, W, K*Cin)
    y = jax.lax.dot_general(
        patches.astype(cdt), w.astype(cdt),
        dimension_numbers=(((2,), (1,)), ((0,), (0,))),
        preferred_element_type=jnp.float32)                      # (TN, W, Co)

    # --- InstanceNorm1d over W (per sample/channel, biased var, eps=1e-5) ----
    mean = jnp.mean(y, axis=1, keepdims=True)
    var = jnp.mean(jnp.square(y - mean), axis=1, keepdims=True)
    yn = (y - mean) * jax.lax.rsqrt(var + 1e-5)
    yn = yn * gamma_ref[...][None, :, :] + beta_ref[...][None, :, :]

    # --- Mish with a single transcendental:
    #     tanh(softplus(v)) = u*(u+2) / (u*(u+2) + 2),  u = exp(v)  (no
    #     cancellation; cap keeps exp finite, ratio saturates to 1 exactly).
    u = jnp.exp(jnp.minimum(yn, 20.0))
    num = u * (u + 2.0)
    return yn * (num / (num + 2.0))


def _fused_subnet_kernel(t_ref, x_ref,
                         gw1_ref, gb1_ref, kb1_ref, nw1_ref, nb1_ref,
                         gw2_ref, gb2_ref, kb2_ref, nw2_ref, nb2_ref,
                         o_ref, *, compute_dtype):
    tb = t_ref[:, 0, :]                                          # (TN, T)
    xb = x_ref[...]                                              # (TN, W, Ci)
    h = _mode_layer(xb, tb, gw1_ref, gb1_ref, kb1_ref, nw1_ref, nb1_ref,
                    compute_dtype)                               # layer-1 output
    y = _mode_layer(h, tb, gw2_ref, gb2_ref, kb2_ref, nw2_ref, nb2_ref,
                    compute_dtype)                               # layer-2 output
    o_ref[...] = y.astype(o_ref.dtype)


def _build_layer_params(p, ci):
    """Assemble (gate_w^T, gate_b, expert kernel bank, norm gamma, norm beta)."""
    K, E = KSIZE, NUM_EXPERTS
    co = p["conv5"].shape[0]
    pool3 = jnp.full((3,), 1.0 / 3.0, jnp.float32)
    pool5 = jnp.full((5,), 1.0 / 5.0, jnp.float32)
    c5 = p["conv5"]                                              # (Co, Ci, 5)
    c3 = jnp.pad(p["conv3"], ((0, 0), (0, 0), (K - 3, 0)))       # left-pad to 5
    c1 = jnp.pad(p["conv1"], ((0, 0), (0, 0), (K - 1, 0)))
    a3 = jnp.pad(p["avg3"] * pool3, ((0, 0), (0, 0), (K - 3, 0)))
    a5 = p["avg5"] * pool5
    bank = jnp.stack([c5, c3, c1, a3, a5], axis=0)               # (E, Co, Ci, K)
    bank = jnp.transpose(bank, (0, 3, 2, 1)).reshape(E, K * ci, co)
    gwt = jnp.transpose(p["gate_w"], (0, 2, 1))                  # (E, T, Co)
    return gwt, p["gate_b"], bank, p["norm_w"][None, :], p["norm_b"][None, :]


def _pick_tn(n):
    # Batch several samples per grid step to amortize per-step overhead, but
    # keep >= 2 grid steps so both v7x TensorCores get work under "parallel".
    if n <= 2:
        return 1
    return max(1, min(8, n // 2))


def mode_subnet_2conv(x, t, params, *, compute_dtype=jnp.bfloat16):
    """Fused two-layer MoDEConv. x: (N, W, Ci), t: (N, T) -> (N, W, Co) f32."""
    N, W, Ci = x.shape
    T = t.shape[1]
    Co = params["conv1"]["conv5"].shape[0]
    K, E = KSIZE, NUM_EXPERTS

    gw1, gb1, kb1, nw1, nb1 = _build_layer_params(params["conv1"], Ci)
    gw2, gb2, kb2, nw2, nb2 = _build_layer_params(params["conv2"], Co)

    TN = _pick_tn(N)
    NB = -(-N // TN)
    Np = NB * TN
    if Np != N:                       # pad batch to a multiple of TN (sliced off)
        x = jnp.pad(x, ((0, Np - N), (0, 0), (0, 0)))
        t = jnp.pad(t, ((0, Np - N), (0, 0)))
    t3 = t[:, None, :]                # (Np, 1, T)

    grid_spec = pltpu.PrefetchScalarGridSpec(
        num_scalar_prefetch=0,
        grid=(NB,),
        in_specs=[
            pl.BlockSpec((TN, 1, T), lambda n: (n, 0, 0)),          # t
            pl.BlockSpec((TN, W, Ci), lambda n: (n, 0, 0)),         # x (unpadded)
            # layer-1 params (grid-invariant -> DMA'd once)
            pl.BlockSpec((E, T, Co), lambda n: (0, 0, 0)),
            pl.BlockSpec((E, Co), lambda n: (0, 0)),
            pl.BlockSpec((E, K * Ci, Co), lambda n: (0, 0, 0)),
            pl.BlockSpec((1, Co), lambda n: (0, 0)),
            pl.BlockSpec((1, Co), lambda n: (0, 0)),
            # layer-2 params (grid-invariant)
            pl.BlockSpec((E, T, Co), lambda n: (0, 0, 0)),
            pl.BlockSpec((E, Co), lambda n: (0, 0)),
            pl.BlockSpec((E, K * Co, Co), lambda n: (0, 0, 0)),
            pl.BlockSpec((1, Co), lambda n: (0, 0)),
            pl.BlockSpec((1, Co), lambda n: (0, 0)),
        ],
        out_specs=pl.BlockSpec((TN, W, Co), lambda n: (n, 0, 0)),
    )

    kernel = functools.partial(_fused_subnet_kernel, compute_dtype=compute_dtype)

    y = pl.pallas_call(
        kernel,
        out_shape=jax.ShapeDtypeStruct((Np, W, Co), jnp.float32),
        grid_spec=grid_spec,
        compiler_params=pltpu.CompilerParams(
            dimension_semantics=("parallel",),
            vmem_limit_bytes=64 * 1024 * 1024),
    )(t3, x, gw1, gb1, kb1, nw1, nb1, gw2, gb2, kb2, nw2, nb2)

    return y[:N]


def init_mode_conv_params(key, num_tasks, in_chan, out_chan):
    """Deterministic synthetic init, mirroring the PyTorch __init__ shapes."""
    ks = jax.random.split(key, 7)

    def conv_w(k, co, ci, ksz):
        # kaiming_uniform_(a=sqrt(5), mode='fan_out') -> bound = 1/sqrt(co*ksz)
        bound = 1.0 / math.sqrt(co * ksz)
        return jax.random.uniform(k, (co, ci, ksz), jnp.float32, -bound, bound)

    p = {
        "conv5": conv_w(ks[0], out_chan, in_chan, 5),
        "conv3": conv_w(ks[1], out_chan, in_chan, 3),
        "conv1": conv_w(ks[2], out_chan, in_chan, 1),
        "avg3": conv_w(ks[3], out_chan, in_chan, 1),
        "avg5": conv_w(ks[4], out_chan, in_chan, 1),
    }
    gbound = 1.0 / math.sqrt(num_tasks)   # nn.Linear default init bound
    p["gate_w"] = jax.random.uniform(
        ks[5], (NUM_EXPERTS, out_chan, num_tasks), jnp.float32, -gbound, gbound)
    p["gate_b"] = jax.random.uniform(
        ks[6], (NUM_EXPERTS, out_chan), jnp.float32, -gbound, gbound)
    p["norm_w"] = jnp.ones((out_chan,), jnp.float32)    # InstanceNorm1d affine
    p["norm_b"] = jnp.zeros((out_chan,), jnp.float32)
    return p


if __name__ == "__main__":
    key = jax.random.PRNGKey(0)
    k1, k2, kx = jax.random.split(key, 3)

    N, W = 2, 16
    num_experts, num_tasks = 5, 4
    n_in, n_out = 8, 16

    params = {
        "conv1": init_mode_conv_params(k1, num_tasks, n_in, n_out),
        "conv2": init_mode_conv_params(k2, num_tasks, n_out, n_out),
    }
    x = jax.random.normal(kx, (N, W, n_in), jnp.float32)
    t = jax.nn.one_hot(jnp.array([0, 2]), num_tasks, dtype=jnp.float32)

    y = jax.jit(mode_subnet_2conv)(x, t, params)
    y = jax.block_until_ready(y)
    assert y.shape == (N, W, n_out) and y.dtype == jnp.float32
    assert bool(jnp.all(jnp.isfinite(y)))
    print("KERNEL_OK")
</pallas_src>

<mosaic_0001>
module attributes {stable_mosaic.version = 11 : i64} {
  func.func @_fused_subnet_kernel(%arg0: i32, %arg1: memref<1x1x4xf32, #tpu.memory_space<vmem>>, %arg2: memref<1x16x8xf32, #tpu.memory_space<vmem>>, %arg3: memref<5x4x16xf32, #tpu.memory_space<vmem>>, %arg4: memref<5x16xf32, #tpu.memory_space<vmem>>, %arg5: memref<5x40x16xf32, #tpu.memory_space<vmem>>, %arg6: memref<1x16xf32, #tpu.memory_space<vmem>>, %arg7: memref<1x16xf32, #tpu.memory_space<vmem>>, %arg8: memref<5x4x16xf32, #tpu.memory_space<vmem>>, %arg9: memref<5x16xf32, #tpu.memory_space<vmem>>, %arg10: memref<5x80x16xf32, #tpu.memory_space<vmem>>, %arg11: memref<1x16xf32, #tpu.memory_space<vmem>>, %arg12: memref<1x16xf32, #tpu.memory_space<vmem>>, %arg13: memref<1x16x16xf32, #tpu.memory_space<vmem>>) attributes {dimension_semantics = [#tpu.dimension_semantics<parallel>], iteration_bounds = array<i64: 2>, scalar_prefetch = 0 : i64, scratch_operands = 0 : i64, tpu.core_type = #tpu.core_type<tc>, window_params = [{transform_indices = @transform_0, window_bounds = array<i64: 1, 1, 4>}, {transform_indices = @transform_1, window_bounds = array<i64: 1, 16, 8>}, {pipeline_mode = #tpu.pipeline_mode<synchronous>, transform_indices = @transform_2, window_bounds = array<i64: 5, 4, 16>}, {pipeline_mode = #tpu.pipeline_mode<synchronous>, transform_indices = @transform_3, window_bounds = array<i64: 5, 16>}, {pipeline_mode = #tpu.pipeline_mode<synchronous>, transform_indices = @transform_4, window_bounds = array<i64: 5, 40, 16>}, {pipeline_mode = #tpu.pipeline_mode<synchronous>, transform_indices = @transform_5, window_bounds = array<i64: 1, 16>}, {pipeline_mode = #tpu.pipeline_mode<synchronous>, transform_indices = @transform_6, window_bounds = array<i64: 1, 16>}, {pipeline_mode = #tpu.pipeline_mode<synchronous>, transform_indices = @transform_7, window_bounds = array<i64: 5, 4, 16>}, {pipeline_mode = #tpu.pipeline_mode<synchronous>, transform_indices = @transform_8, window_bounds = array<i64: 5, 16>}, {pipeline_mode = #tpu.pipeline_mode<synchronous>, transform_indices = @transform_9, window_bounds = array<i64: 5, 80, 16>}, {pipeline_mode = #tpu.pipeline_mode<synchronous>, transform_indices = @transform_10, window_bounds = array<i64: 1, 16>}, {pipeline_mode = #tpu.pipeline_mode<synchronous>, transform_indices = @transform_11, window_bounds = array<i64: 1, 16>}, {transform_indices = @transform_12, window_bounds = array<i64: 1, 16, 16>}]} {
    %c0 = arith.constant 0 : index
    %c0_0 = arith.constant 0 : index
    %c0_1 = arith.constant 0 : index
    %0 = vector.load %arg1[%c0, %c0_0, %c0_1] : memref<1x1x4xf32, #tpu.memory_space<vmem>>, vector<1x1x4xf32>
    %1 = vector.shape_cast %0 : vector<1x1x4xf32> to vector<1x4xf32>
    %c0_2 = arith.constant 0 : index
    %c0_3 = arith.constant 0 : index
    %c0_4 = arith.constant 0 : index
    %2 = vector.load %arg2[%c0_2, %c0_3, %c0_4] : memref<1x16x8xf32, #tpu.memory_space<vmem>>, vector<1x16x8xf32>
    %c0_5 = arith.constant 0 : index
    %c0_6 = arith.constant 0 : index
    %c0_7 = arith.constant 0 : index
    %3 = vector.load %arg3[%c0_5, %c0_6, %c0_7] : memref<5x4x16xf32, #tpu.memory_space<vmem>>, vector<1x4x16xf32>
    %4 = vector.shape_cast %3 : vector<1x4x16xf32> to vector<4x16xf32>
    %cst = arith.constant dense<0.000000e+00> : vector<1x16xf32>
    %5 = tpu.matmul %1, %4, %cst {dimension_numbers = #tpu.dot_dimension_numbers<[1], [0], [0], [1], [0, 0, 1, 1], [], []>} : vector<1x4xf32>, vector<4x16xf32>, vector<1x16xf32> -> vector<1x16xf32>
    %c0_8 = arith.constant 0 : index
    %c0_9 = arith.constant 0 : index
    %6 = vector.load %arg4[%c0_8, %c0_9] : memref<5x16xf32, #tpu.memory_space<vmem>>, vector<1x16xf32>
    %7 = vector.shape_cast %6 : vector<1x16xf32> to vector<16xf32>
    %8 = vector.shape_cast %7 : vector<16xf32> to vector<1x16xf32>
    %9 = arith.addf %5, %8 : vector<1x16xf32>
    %c1 = arith.constant 1 : index
    %c0_10 = arith.constant 0 : index
    %c0_11 = arith.constant 0 : index
    %10 = vector.load %arg3[%c1, %c0_10, %c0_11] : memref<5x4x16xf32, #tpu.memory_space<vmem>>, vector<1x4x16xf32>
    %11 = vector.shape_cast %10 : vector<1x4x16xf32> to vector<4x16xf32>
    %cst_12 = arith.constant dense<0.000000e+00> : vector<1x16xf32>
    %12 = tpu.matmul %1, %11, %cst_12 {dimension_numbers = #tpu.dot_dimension_numbers<[1], [0], [0], [1], [0, 0, 1, 1], [], []>} : vector<1x4xf32>, vector<4x16xf32>, vector<1x16xf32> -> vector<1x16xf32>
    %c1_13 = arith.constant 1 : index
    %c0_14 = arith.constant 0 : index
    %13 = vector.load %arg4[%c1_13, %c0_14] : memref<5x16xf32, #tpu.memory_space<vmem>>, vector<1x16xf32>
    %14 = vector.shape_cast %13 : vector<1x16xf32> to vector<16xf32>
    %15 = vector.shape_cast %14 : vector<16xf32> to vector<1x16xf32>
    %16 = arith.addf %12, %15 : vector<1x16xf32>
    %c2 = arith.constant 2 : index
    %c0_15 = arith.constant 0 : index
    %c0_16 = arith.constant 0 : index
    %17 = vector.load %arg3[%c2, %c0_15, %c0_16] : memref<5x4x16xf32, #tpu.memory_space<vmem>>, vector<1x4x16xf32>
    %18 = vector.shape_cast %17 : vector<1x4x16xf32> to vector<4x16xf32>
    %cst_17 = arith.constant dense<0.000000e+00> : vector<1x16xf32>
    %19 = tpu.matmul %1, %18, %cst_17 {dimension_numbers = #tpu.dot_dimension_numbers<[1], [0], [0], [1], [0, 0, 1, 1], [], []>} : vector<1x4xf32>, vector<4x16xf32>, vector<1x16xf32> -> vector<1x16xf32>
    %c2_18 = arith.constant 2 : index
    %c0_19 = arith.constant 0 : index
    %20 = vector.load %arg4[%c2_18, %c0_19] : memref<5x16xf32, #tpu.memory_space<vmem>>, vector<1x16xf32>
    %21 = vector.shape_cast %20 : vector<1x16xf32> to vector<16xf32>
    %22 = vector.shape_cast %21 : vector<16xf32> to vector<1x16xf32>
    %23 = arith.addf %19, %22 : vector<1x16xf32>
    %c3 = arith.constant 3 : index
    %c0_20 = arith.constant 0 : index
    %c0_21 = arith.constant 0 : index
    %24 = vector.load %arg3[%c3, %c0_20, %c0_21] : memref<5x4x16xf32, #tpu.memory_space<vmem>>, vector<1x4x16xf32>
    %25 = vector.shape_cast %24 : vector<1x4x16xf32> to vector<4x16xf32>
    %cst_22 = arith.constant dense<0.000000e+00> : vector<1x16xf32>
    %26 = tpu.matmul %1, %25, %cst_22 {dimension_numbers = #tpu.dot_dimension_numbers<[1], [0], [0], [1], [0, 0, 1, 1], [], []>} : vector<1x4xf32>, vector<4x16xf32>, vector<1x16xf32> -> vector<1x16xf32>
    %c3_23 = arith.constant 3 : index
    %c0_24 = arith.constant 0 : index
    %27 = vector.load %arg4[%c3_23, %c0_24] : memref<5x16xf32, #tpu.memory_space<vmem>>, vector<1x16xf32>
    %28 = vector.shape_cast %27 : vector<1x16xf32> to vector<16xf32>
    %29 = vector.shape_cast %28 : vector<16xf32> to vector<1x16xf32>
    %30 = arith.addf %26, %29 : vector<1x16xf32>
    %c4 = arith.constant 4 : index
    %c0_25 = arith.constant 0 : index
    %c0_26 = arith.constant 0 : index
    %31 = vector.load %arg3[%c4, %c0_25, %c0_26] : memref<5x4x16xf32, #tpu.memory_space<vmem>>, vector<1x4x16xf32>
    %32 = vector.shape_cast %31 : vector<1x4x16xf32> to vector<4x16xf32>
    %cst_27 = arith.constant dense<0.000000e+00> : vector<1x16xf32>
    %33 = tpu.matmul %1, %32, %cst_27 {dimension_numbers = #tpu.dot_dimension_numbers<[1], [0], [0], [1], [0, 0, 1, 1], [], []>} : vector<1x4xf32>, vector<4x16xf32>, vector<1x16xf32> -> vector<1x16xf32>
    %c4_28 = arith.constant 4 : index
    %c0_29 = arith.constant 0 : index
    %34 = vector.load %arg4[%c4_28, %c0_29] : memref<5x16xf32, #tpu.memory_space<vmem>>, vector<1x16xf32>
    %35 = vector.shape_cast %34 : vector<1x16xf32> to vector<16xf32>
    %36 = vector.shape_cast %35 : vector<16xf32> to vector<1x16xf32>
    %37 = arith.addf %33, %36 : vector<1x16xf32>
    %38 = arith.maximumf %9, %16 : vector<1x16xf32>
    %39 = arith.maximumf %38, %23 : vector<1x16xf32>
    %40 = arith.maximumf %39, %30 : vector<1x16xf32>
    %41 = arith.maximumf %40, %37 : vector<1x16xf32>
    %42 = arith.subf %9, %41 : vector<1x16xf32>
    %43 = math.exp %42 : vector<1x16xf32>
    %44 = arith.subf %16, %41 : vector<1x16xf32>
    %45 = math.exp %44 : vector<1x16xf32>
    %46 = arith.subf %23, %41 : vector<1x16xf32>
    %47 = math.exp %46 : vector<1x16xf32>
    %48 = arith.subf %30, %41 : vector<1x16xf32>
    %49 = math.exp %48 : vector<1x16xf32>
    %50 = arith.subf %37, %41 : vector<1x16xf32>
    %51 = math.exp %50 : vector<1x16xf32>
    %52 = arith.addf %43, %45 : vector<1x16xf32>
    %53 = arith.addf %52, %47 : vector<1x16xf32>
    %54 = arith.addf %53, %49 : vector<1x16xf32>
    %55 = arith.addf %54, %51 : vector<1x16xf32>
    %cst_30 = arith.constant 1.000000e+00 : f32
    %56 = vector.broadcast %cst_30 : f32 to vector<1x16xf32>
    %57 = arith.divf %56, %55 : vector<1x16xf32>
    %58 = arith.mulf %43, %57 : vector<1x16xf32>
    %59 = vector.shape_cast %58 : vector<1x16xf32> to vector<1x1x16xf32>
    %c0_31 = arith.constant 0 : index
    %c0_32 = arith.constant 0 : index
    %c0_33 = arith.constant 0 : index
    %60 = vector.load %arg5[%c0_31, %c0_32, %c0_33] : memref<5x40x16xf32, #tpu.memory_space<vmem>>, vector<1x40x16xf32>
    %61 = vector.shape_cast %60 : vector<1x40x16xf32> to vector<40x16xf32>
    %62 = vector.shape_cast %61 : vector<40x16xf32> to vector<1x40x16xf32>
    %63 = vector.broadcast %59 : vector<1x1x16xf32> to vector<1x40x16xf32>
    %64 = arith.mulf %63, %62 : vector<1x40x16xf32>
    %65 = arith.mulf %45, %57 : vector<1x16xf32>
    %66 = vector.shape_cast %65 : vector<1x16xf32> to vector<1x1x16xf32>
    %c1_34 = arith.constant 1 : index
    %c0_35 = arith.constant 0 : index
    %c0_36 = arith.constant 0 : index
    %67 = vector.load %arg5[%c1_34, %c0_35, %c0_36] : memref<5x40x16xf32, #tpu.memory_space<vmem>>, vector<1x40x16xf32>
    %68 = vector.shape_cast %67 : vector<1x40x16xf32> to vector<40x16xf32>
    %69 = vector.shape_cast %68 : vector<40x16xf32> to vector<1x40x16xf32>
    %70 = vector.broadcast %66 : vector<1x1x16xf32> to vector<1x40x16xf32>
    %71 = arith.mulf %70, %69 : vector<1x40x16xf32>
    %72 = arith.addf %64, %71 : vector<1x40x16xf32>
    %73 = arith.mulf %47, %57 : vector<1x16xf32>
    %74 = vector.shape_cast %73 : vector<1x16xf32> to vector<1x1x16xf32>
    %c2_37 = arith.constant 2 : index
    %c0_38 = arith.constant 0 : index
    %c0_39 = arith.constant 0 : index
    %75 = vector.load %arg5[%c2_37, %c0_38, %c0_39] : memref<5x40x16xf32, #tpu.memory_space<vmem>>, vector<1x40x16xf32>
    %76 = vector.shape_cast %75 : vector<1x40x16xf32> to vector<40x16xf32>
    %77 = vector.shape_cast %76 : vector<40x16xf32> to vector<1x40x16xf32>
    %78 = vector.broadcast %74 : vector<1x1x16xf32> to vector<1x40x16xf32>
    %79 = arith.mulf %78, %77 : vector<1x40x16xf32>
    %80 = arith.addf %72, %79 : vector<1x40x16xf32>
    %81 = arith.mulf %49, %57 : vector<1x16xf32>
    %82 = vector.shape_cast %81 : vector<1x16xf32> to vector<1x1x16xf32>
    %c3_40 = arith.constant 3 : index
    %c0_41 = arith.constant 0 : index
    %c0_42 = arith.constant 0 : index
    %83 = vector.load %arg5[%c3_40, %c0_41, %c0_42] : memref<5x40x16xf32, #tpu.memory_space<vmem>>, vector<1x40x16xf32>
    %84 = vector.shape_cast %83 : vector<1x40x16xf32> to vector<40x16xf32>
    %85 = vector.shape_cast %84 : vector<40x16xf32> to vector<1x40x16xf32>
    %86 = vector.broadcast %82 : vector<1x1x16xf32> to vector<1x40x16xf32>
    %87 = arith.mulf %86, %85 : vector<1x40x16xf32>
    %88 = arith.addf %80, %87 : vector<1x40x16xf32>
    %89 = arith.mulf %51, %57 : vector<1x16xf32>
    %90 = vector.shape_cast %89 : vector<1x16xf32> to vector<1x1x16xf32>
    %c4_43 = arith.constant 4 : index
    %c0_44 = arith.constant 0 : index
    %c0_45 = arith.constant 0 : index
    %91 = vector.load %arg5[%c4_43, %c0_44, %c0_45] : memref<5x40x16xf32, #tpu.memory_space<vmem>>, vector<1x40x16xf32>
    %92 = vector.shape_cast %91 : vector<1x40x16xf32> to vector<40x16xf32>
    %93 = vector.shape_cast %92 : vector<40x16xf32> to vector<1x40x16xf32>
    %94 = vector.broadcast %90 : vector<1x1x16xf32> to vector<1x40x16xf32>
    %95 = arith.mulf %94, %93 : vector<1x40x16xf32>
    %96 = arith.addf %88, %95 : vector<1x40x16xf32>
    %cst_46 = arith.constant 0.000000e+00 : f32
    %97 = vector.broadcast %cst_46 : f32 to vector<1x4x8xf32>
    %98 = tpu.concatenate %97, %2 in 1 : vector<1x4x8xf32>, vector<1x16x8xf32> -> vector<1x20x8xf32>
    %99 = vector.extract_strided_slice %98 {offsets = [0, 0, 0], sizes = [1, 16, 8], strides = [1, 1, 1]} : vector<1x20x8xf32> to vector<1x16x8xf32>
    %100 = vector.extract_strided_slice %98 {offsets = [0, 1, 0], sizes = [1, 16, 8], strides = [1, 1, 1]} : vector<1x20x8xf32> to vector<1x16x8xf32>
    %101 = vector.extract_strided_slice %98 {offsets = [0, 2, 0], sizes = [1, 16, 8], strides = [1, 1, 1]} : vector<1x20x8xf32> to vector<1x16x8xf32>
    %102 = vector.extract_strided_slice %98 {offsets = [0, 3, 0], sizes = [1, 16, 8], strides = [1, 1, 1]} : vector<1x20x8xf32> to vector<1x16x8xf32>
    %103 = vector.extract_strided_slice %98 {offsets = [0, 4, 0], sizes = [1, 16, 8], strides = [1, 1, 1]} : vector<1x20x8xf32> to vector<1x16x8xf32>
    %104 = tpu.concatenate %99, %100, %101, %102, %103 in 2 : vector<1x16x8xf32>, vector<1x16x8xf32>, vector<1x16x8xf32>, vector<1x16x8xf32>, vector<1x16x8xf32> -> vector<1x16x40xf32>
    %105 = arith.truncf %104 : vector<1x16x40xf32> to vector<1x16x40xbf16>
    %106 = arith.truncf %96 : vector<1x40x16xf32> to vector<1x40x16xbf16>
    %cst_47 = arith.constant dense<0.000000e+00> : vector<1x16x16xf32>
    %107 = tpu.matmul %105, %106, %cst_47 {dimension_numbers = #tpu.dot_dimension_numbers<[2], [1], [1], [2], [0, 0, 0, 1, 1, 2], [0], [0]>} : vector<1x16x40xbf16>, vector<1x40x16xbf16>, vector<1x16x16xf32> -> vector<1x16x16xf32>
    %cst_48 = arith.constant dense<0.000000e+00> : vector<1x16xf32>
    %108 = vector.multi_reduction <add>, %107, %cst_48 [1] : vector<1x16x16xf32> to vector<1x16xf32>
    %109 = vector.shape_cast %108 : vector<1x16xf32> to vector<1x1x16xf32>
    %cst_49 = arith.constant 1.600000e+01 : f32
    %110 = vector.broadcast %cst_49 : f32 to vector<1x1x16xf32>
    %111 = arith.divf %109, %110 : vector<1x1x16xf32>
    %112 = vector.broadcast %111 : vector<1x1x16xf32> to vector<1x16x16xf32>
    %113 = arith.subf %107, %112 : vector<1x16x16xf32>
    %114 = arith.mulf %113, %113 : vector<1x16x16xf32>
    %cst_50 = arith.constant dense<0.000000e+00> : vector<1x16xf32>
    %115 = vector.multi_reduction <add>, %114, %cst_50 [1] : vector<1x16x16xf32> to vector<1x16xf32>
    %116 = vector.shape_cast %115 : vector<1x16xf32> to vector<1x1x16xf32>
    %cst_51 = arith.constant 1.600000e+01 : f32
    %117 = vector.broadcast %cst_51 : f32 to vector<1x1x16xf32>
    %118 = arith.divf %116, %117 : vector<1x1x16xf32>
    %119 = vector.broadcast %111 : vector<1x1x16xf32> to vector<1x16x16xf32>
    %120 = arith.subf %107, %119 : vector<1x16x16xf32>
    %cst_52 = arith.constant 9.99999974E-6 : f32
    %121 = vector.broadcast %cst_52 : f32 to vector<1x1x16xf32>
    %122 = arith.addf %118, %121 : vector<1x1x16xf32>
    %123 = math.rsqrt %122 : vector<1x1x16xf32>
    %124 = vector.broadcast %123 : vector<1x1x16xf32> to vector<1x16x16xf32>
    %125 = arith.mulf %120, %124 : vector<1x16x16xf32>
    %c0_53 = arith.constant 0 : index
    %c0_54 = arith.constant 0 : index
    %126 = vector.load %arg6[%c0_53, %c0_54] : memref<1x16xf32, #tpu.memory_space<vmem>>, vector<1x16xf32>
    %127 = vector.shape_cast %126 : vector<1x16xf32> to vector<1x1x16xf32>
    %128 = vector.broadcast %127 : vector<1x1x16xf32> to vector<1x16x16xf32>
    %129 = arith.mulf %125, %128 : vector<1x16x16xf32>
    %c0_55 = arith.constant 0 : index
    %c0_56 = arith.constant 0 : index
    %130 = vector.load %arg7[%c0_55, %c0_56] : memref<1x16xf32, #tpu.memory_space<vmem>>, vector<1x16xf32>
    %131 = vector.shape_cast %130 : vector<1x16xf32> to vector<1x1x16xf32>
    %132 = vector.broadcast %131 : vector<1x1x16xf32> to vector<1x16x16xf32>
    %133 = arith.addf %129, %132 : vector<1x16x16xf32>
    %cst_57 = arith.constant 2.000000e+01 : f32
    %134 = vector.broadcast %cst_57 : f32 to vector<1x16x16xf32>
    %135 = arith.minimumf %133, %134 : vector<1x16x16xf32>
    %136 = math.exp %135 : vector<1x16x16xf32>
    %cst_58 = arith.constant 2.000000e+00 : f32
    %137 = vector.broadcast %cst_58 : f32 to vector<1x16x16xf32>
    %138 = arith.addf %136, %137 : vector<1x16x16xf32>
    %139 = arith.mulf %136, %138 : vector<1x16x16xf32>
    %cst_59 = arith.constant 2.000000e+00 : f32
    %140 = vector.broadcast %cst_59 : f32 to vector<1x16x16xf32>
    %141 = arith.addf %139, %140 : vector<1x16x16xf32>
    %142 = arith.divf %139, %141 : vector<1x16x16xf32>
    %143 = arith.mulf %133, %142 : vector<1x16x16xf32>
    %c0_60 = arith.constant 0 : index
    %c0_61 = arith.constant 0 : index
    %c0_62 = arith.constant 0 : index
    %144 = vector.load %arg8[%c0_60, %c0_61, %c0_62] : memref<5x4x16xf32, #tpu.memory_space<vmem>>, vector<1x4x16xf32>
    %145 = vector.shape_cast %144 : vector<1x4x16xf32> to vector<4x16xf32>
    %cst_63 = arith.constant dense<0.000000e+00> : vector<1x16xf32>
    %146 = tpu.matmul %1, %145, %cst_63 {dimension_numbers = #tpu.dot_dimension_numbers<[1], [0], [0], [1], [0, 0, 1, 1], [], []>} : vector<1x4xf32>, vector<4x16xf32>, vector<1x16xf32> -> vector<1x16xf32>
    %c0_64 = arith.constant 0 : index
    %c0_65 = arith.constant 0 : index
    %147 = vector.load %arg9[%c0_64, %c0_65] : memref<5x16xf32, #tpu.memory_space<vmem>>, vector<1x16xf32>
    %148 = vector.shape_cast %147 : vector<1x16xf32> to vector<16xf32>
    %149 = vector.shape_cast %148 : vector<16xf32> to vector<1x16xf32>
    %150 = arith.addf %146, %149 : vector<1x16xf32>
    %c1_66 = arith.constant 1 : index
    %c0_67 = arith.constant 0 : index
    %c0_68 = arith.constant 0 : index
    %151 = vector.load %arg8[%c1_66, %c0_67, %c0_68] : memref<5x4x16xf32, #tpu.memory_space<vmem>>, vector<1x4x16xf32>
    %152 = vector.shape_cast %151 : vector<1x4x16xf32> to vector<4x16xf32>
    %cst_69 = arith.constant dense<0.000000e+00> : vector<1x16xf32>
    %153 = tpu.matmul %1, %152, %cst_69 {dimension_numbers = #tpu.dot_dimension_numbers<[1], [0], [0], [1], [0, 0, 1, 1], [], []>} : vector<1x4xf32>, vector<4x16xf32>, vector<1x16xf32> -> vector<1x16xf32>
    %c1_70 = arith.constant 1 : index
    %c0_71 = arith.constant 0 : index
    %154 = vector.load %arg9[%c1_70, %c0_71] : memref<5x16xf32, #tpu.memory_space<vmem>>, vector<1x16xf32>
    %155 = vector.shape_cast %154 : vector<1x16xf32> to vector<16xf32>
    %156 = vector.shape_cast %155 : vector<16xf32> to vector<1x16xf32>
    %157 = arith.addf %153, %156 : vector<1x16xf32>
    %c2_72 = arith.constant 2 : index
    %c0_73 = arith.constant 0 : index
    %c0_74 = arith.constant 0 : index
    %158 = vector.load %arg8[%c2_72, %c0_73, %c0_74] : memref<5x4x16xf32, #tpu.memory_space<vmem>>, vector<1x4x16xf32>
    %159 = vector.shape_cast %158 : vector<1x4x16xf32> to vector<4x16xf32>
    %cst_75 = arith.constant dense<0.000000e+00> : vector<1x16xf32>
    %160 = tpu.matmul %1, %159, %cst_75 {dimension_numbers = #tpu.dot_dimension_numbers<[1], [0], [0], [1], [0, 0, 1, 1], [], []>} : vector<1x4xf32>, vector<4x16xf32>, vector<1x16xf32> -> vector<1x16xf32>
    %c2_76 = arith.constant 2 : index
    %c0_77 = arith.constant 0 : index
    %161 = vector.load %arg9[%c2_76, %c0_77] : memref<5x16xf32, #tpu.memory_space<vmem>>, vector<1x16xf32>
    %162 = vector.shape_cast %161 : vector<1x16xf32> to vector<16xf32>
    %163 = vector.shape_cast %162 : vector<16xf32> to vector<1x16xf32>
    %164 = arith.addf %160, %163 : vector<1x16xf32>
    %c3_78 = arith.constant 3 : index
    %c0_79 = arith.constant 0 : index
    %c0_80 = arith.constant 0 : index
    %165 = vector.load %arg8[%c3_78, %c0_79, %c0_80] : memref<5x4x16xf32, #tpu.memory_space<vmem>>, vector<1x4x16xf32>
    %166 = vector.shape_cast %165 : vector<1x4x16xf32> to vector<4x16xf32>
    %cst_81 = arith.constant dense<0.000000e+00> : vector<1x16xf32>
    %167 = tpu.matmul %1, %166, %cst_81 {dimension_numbers = #tpu.dot_dimension_numbers<[1], [0], [0], [1], [0, 0, 1, 1], [], []>} : vector<1x4xf32>, vector<4x16xf32>, vector<1x16xf32> -> vector<1x16xf32>
    %c3_82 = arith.constant 3 : index
    %c0_83 = arith.constant 0 : index
    %168 = vector.load %arg9[%c3_82, %c0_83] : memref<5x16xf32, #tpu.memory_space<vmem>>, vector<1x16xf32>
    %169 = vector.shape_cast %168 : vector<1x16xf32> to vector<16xf32>
    %170 = vector.shape_cast %169 : vector<16xf32> to vector<1x16xf32>
    %171 = arith.addf %167, %170 : vector<1x16xf32>
    %c4_84 = arith.constant 4 : index
    %c0_85 = arith.constant 0 : index
    %c0_86 = arith.constant 0 : index
    %172 = vector.load %arg8[%c4_84, %c0_85, %c0_86] : memref<5x4x16xf32, #tpu.memory_space<vmem>>, vector<1x4x16xf32>
    %173 = vector.shape_cast %172 : vector<1x4x16xf32> to vector<4x16xf32>
    %cst_87 = arith.constant dense<0.000000e+00> : vector<1x16xf32>
    %174 = tpu.matmul %1, %173, %cst_87 {dimension_numbers = #tpu.dot_dimension_numbers<[1], [0], [0], [1], [0, 0, 1, 1], [], []>} : vector<1x4xf32>, vector<4x16xf32>, vector<1x16xf32> -> vector<1x16xf32>
    %c4_88 = arith.constant 4 : index
    %c0_89 = arith.constant 0 : index
    %175 = vector.load %arg9[%c4_88, %c0_89] : memref<5x16xf32, #tpu.memory_space<vmem>>, vector<1x16xf32>
    %176 = vector.shape_cast %175 : vector<1x16xf32> to vector<16xf32>
    %177 = vector.shape_cast %176 : vector<16xf32> to vector<1x16xf32>
    %178 = arith.addf %174, %177 : vector<1x16xf32>
    %179 = arith.maximumf %150, %157 : vector<1x16xf32>
    %180 = arith.maximumf %179, %164 : vector<1x16xf32>
    %181 = arith.maximumf %180, %171 : vector<1x16xf32>
    %182 = arith.maximumf %181, %178 : vector<1x16xf32>
    %183 = arith.subf %150, %182 : vector<1x16xf32>
    %184 = math.exp %183 : vector<1x16xf32>
    %185 = arith.subf %157, %182 : vector<1x16xf32>
    %186 = math.exp %185 : vector<1x16xf32>
    %187 = arith.subf %164, %182 : vector<1x16xf32>
    %188 = math.exp %187 : vector<1x16xf32>
    %189 = arith.subf %171, %182 : vector<1x16xf32>
    %190 = math.exp %189 : vector<1x16xf32>
    %191 = arith.subf %178, %182 : vector<1x16xf32>
    %192 = math.exp %191 : vector<1x16xf32>
    %193 = arith.addf %184, %186 : vector<1x16xf32>
    %194 = arith.addf %193, %188 : vector<1x16xf32>
    %195 = arith.addf %194, %190 : vector<1x16xf32>
    %196 = arith.addf %195, %192 : vector<1x16xf32>
    %cst_90 = arith.constant 1.000000e+00 : f32
    %197 = vector.broadcast %cst_90 : f32 to vector<1x16xf32>
    %198 = arith.divf %197, %196 : vector<1x16xf32>
    %199 = arith.mulf %184, %198 : vector<1x16xf32>
    %200 = vector.shape_cast %199 : vector<1x16xf32> to vector<1x1x16xf32>
    %c0_91 = arith.constant 0 : index
    %c0_92 = arith.constant 0 : index
    %c0_93 = arith.constant 0 : index
    %201 = vector.load %arg10[%c0_91, %c0_92, %c0_93] : memref<5x80x16xf32, #tpu.memory_space<vmem>>, vector<1x80x16xf32>
    %202 = vector.shape_cast %201 : vector<1x80x16xf32> to vector<80x16xf32>
    %203 = vector.shape_cast %202 : vector<80x16xf32> to vector<1x80x16xf32>
    %204 = vector.broadcast %200 : vector<1x1x16xf32> to vector<1x80x16xf32>
    %205 = arith.mulf %204, %203 : vector<1x80x16xf32>
    %206 = arith.mulf %186, %198 : vector<1x16xf32>
    %207 = vector.shape_cast %206 : vector<1x16xf32> to vector<1x1x16xf32>
    %c1_94 = arith.constant 1 : index
    %c0_95 = arith.constant 0 : index
    %c0_96 = arith.constant 0 : index
    %208 = vector.load %arg10[%c1_94, %c0_95, %c0_96] : memref<5x80x16xf32, #tpu.memory_space<vmem>>, vector<1x80x16xf32>
    %209 = vector.shape_cast %208 : vector<1x80x16xf32> to vector<80x16xf32>
    %210 = vector.shape_cast %209 : vector<80x16xf32> to vector<1x80x16xf32>
    %211 = vector.broadcast %207 : vector<1x1x16xf32> to vector<1x80x16xf32>
    %212 = arith.mulf %211, %210 : vector<1x80x16xf32>
    %213 = arith.addf %205, %212 : vector<1x80x16xf32>
    %214 = arith.mulf %188, %198 : vector<1x16xf32>
    %215 = vector.shape_cast %214 : vector<1x16xf32> to vector<1x1x16xf32>
    %c2_97 = arith.constant 2 : index
    %c0_98 = arith.constant 0 : index
    %c0_99 = arith.constant 0 : index
    %216 = vector.load %arg10[%c2_97, %c0_98, %c0_99] : memref<5x80x16xf32, #tpu.memory_space<vmem>>, vector<1x80x16xf32>
    %217 = vector.shape_cast %216 : vector<1x80x16xf32> to vector<80x16xf32>
    %218 = vector.shape_cast %217 : vector<80x16xf32> to vector<1x80x16xf32>
    %219 = vector.broadcast %215 : vector<1x1x16xf32> to vector<1x80x16xf32>
    %220 = arith.mulf %219, %218 : vector<1x80x16xf32>
    %221 = arith.addf %213, %220 : vector<1x80x16xf32>
    %222 = arith.mulf %190, %198 : vector<1x16xf32>
    %223 = vector.shape_cast %222 : vector<1x16xf32> to vector<1x1x16xf32>
    %c3_100 = arith.constant 3 : index
    %c0_101 = arith.constant 0 : index
    %c0_102 = arith.constant 0 : index
    %224 = vector.load %arg10[%c3_100, %c0_101, %c0_102] : memref<5x80x16xf32, #tpu.memory_space<vmem>>, vector<1x80x16xf32>
    %225 = vector.shape_cast %224 : vector<1x80x16xf32> to vector<80x16xf32>
    %226 = vector.shape_cast %225 : vector<80x16xf32> to vector<1x80x16xf32>
    %227 = vector.broadcast %223 : vector<1x1x16xf32> to vector<1x80x16xf32>
    %228 = arith.mulf %227, %226 : vector<1x80x16xf32>
    %229 = arith.addf %221, %228 : vector<1x80x16xf32>
    %230 = arith.mulf %192, %198 : vector<1x16xf32>
    %231 = vector.shape_cast %230 : vector<1x16xf32> to vector<1x1x16xf32>
    %c4_103 = arith.constant 4 : index
    %c0_104 = arith.constant 0 : index
    %c0_105 = arith.constant 0 : index
    %232 = vector.load %arg10[%c4_103, %c0_104, %c0_105] : memref<5x80x16xf32, #tpu.memory_space<vmem>>, vector<1x80x16xf32>
    %233 = vector.shape_cast %232 : vector<1x80x16xf32> to vector<80x16xf32>
    %234 = vector.shape_cast %233 : vector<80x16xf32> to vector<1x80x16xf32>
    %235 = vector.broadcast %231 : vector<1x1x16xf32> to vector<1x80x16xf32>
    %236 = arith.mulf %235, %234 : vector<1x80x16xf32>
    %237 = arith.addf %229, %236 : vector<1x80x16xf32>
    %cst_106 = arith.constant 0.000000e+00 : f32
    %238 = vector.broadcast %cst_106 : f32 to vector<1x4x16xf32>
    %239 = tpu.concatenate %238, %143 in 1 : vector<1x4x16xf32>, vector<1x16x16xf32> -> vector<1x20x16xf32>
    %240 = vector.extract_strided_slice %239 {offsets = [0, 0, 0], sizes = [1, 16, 16], strides = [1, 1, 1]} : vector<1x20x16xf32> to vector<1x16x16xf32>
    %241 = vector.extract_strided_slice %239 {offsets = [0, 1, 0], sizes = [1, 16, 16], strides = [1, 1, 1]} : vector<1x20x16xf32> to vector<1x16x16xf32>
    %242 = vector.extract_strided_slice %239 {offsets = [0, 2, 0], sizes = [1, 16, 16], strides = [1, 1, 1]} : vector<1x20x16xf32> to vector<1x16x16xf32>
    %243 = vector.extract_strided_slice %239 {offsets = [0, 3, 0], sizes = [1, 16, 16], strides = [1, 1, 1]} : vector<1x20x16xf32> to vector<1x16x16xf32>
    %244 = vector.extract_strided_slice %239 {offsets = [0, 4, 0], sizes = [1, 16, 16], strides = [1, 1, 1]} : vector<1x20x16xf32> to vector<1x16x16xf32>
    %245 = tpu.concatenate %240, %241, %242, %243, %244 in 2 : vector<1x16x16xf32>, vector<1x16x16xf32>, vector<1x16x16xf32>, vector<1x16x16xf32>, vector<1x16x16xf32> -> vector<1x16x80xf32>
    %246 = arith.truncf %245 : vector<1x16x80xf32> to vector<1x16x80xbf16>
    %247 = arith.truncf %237 : vector<1x80x16xf32> to vector<1x80x16xbf16>
    %cst_107 = arith.constant dense<0.000000e+00> : vector<1x16x16xf32>
    %248 = tpu.matmul %246, %247, %cst_107 {dimension_numbers = #tpu.dot_dimension_numbers<[2], [1], [1], [2], [0, 0, 0, 1, 1, 2], [0], [0]>} : vector<1x16x80xbf16>, vector<1x80x16xbf16>, vector<1x16x16xf32> -> vector<1x16x16xf32>
    %cst_108 = arith.constant dense<0.000000e+00> : vector<1x16xf32>
    %249 = vector.multi_reduction <add>, %248, %cst_108 [1] : vector<1x16x16xf32> to vector<1x16xf32>
    %250 = vector.shape_cast %249 : vector<1x16xf32> to vector<1x1x16xf32>
    %cst_109 = arith.constant 1.600000e+01 : f32
    %251 = vector.broadcast %cst_109 : f32 to vector<1x1x16xf32>
    %252 = arith.divf %250, %251 : vector<1x1x16xf32>
    %253 = vector.broadcast %252 : vector<1x1x16xf32> to vector<1x16x16xf32>
    %254 = arith.subf %248, %253 : vector<1x16x16xf32>
    %255 = arith.mulf %254, %254 : vector<1x16x16xf32>
    %cst_110 = arith.constant dense<0.000000e+00> : vector<1x16xf32>
    %256 = vector.multi_reduction <add>, %255, %cst_110 [1] : vector<1x16x16xf32> to vector<1x16xf32>
    %257 = vector.shape_cast %256 : vector<1x16xf32> to vector<1x1x16xf32>
    %cst_111 = arith.constant 1.600000e+01 : f32
    %258 = vector.broadcast %cst_111 : f32 to vector<1x1x16xf32>
    %259 = arith.divf %257, %258 : vector<1x1x16xf32>
    %260 = vector.broadcast %252 : vector<1x1x16xf32> to vector<1x16x16xf32>
    %261 = arith.subf %248, %260 : vector<1x16x16xf32>
    %cst_112 = arith.constant 9.99999974E-6 : f32
    %262 = vector.broadcast %cst_112 : f32 to vector<1x1x16xf32>
    %263 = arith.addf %259, %262 : vector<1x1x16xf32>
    %264 = math.rsqrt %263 : vector<1x1x16xf32>
    %265 = vector.broadcast %264 : vector<1x1x16xf32> to vector<1x16x16xf32>
    %266 = arith.mulf %261, %265 : vector<1x16x16xf32>
    %c0_113 = arith.constant 0 : index
    %c0_114 = arith.constant 0 : index
    %267 = vector.load %arg11[%c0_113, %c0_114] : memref<1x16xf32, #tpu.memory_space<vmem>>, vector<1x16xf32>
    %268 = vector.shape_cast %267 : vector<1x16xf32> to vector<1x1x16xf32>
    %269 = vector.broadcast %268 : vector<1x1x16xf32> to vector<1x16x16xf32>
    %270 = arith.mulf %266, %269 : vector<1x16x16xf32>
    %c0_115 = arith.constant 0 : index
    %c0_116 = arith.constant 0 : index
    %271 = vector.load %arg12[%c0_115, %c0_116] : memref<1x16xf32, #tpu.memory_space<vmem>>, vector<1x16xf32>
    %272 = vector.shape_cast %271 : vector<1x16xf32> to vector<1x1x16xf32>
    %273 = vector.broadcast %272 : vector<1x1x16xf32> to vector<1x16x16xf32>
    %274 = arith.addf %270, %273 : vector<1x16x16xf32>
    %cst_117 = arith.constant 2.000000e+01 : f32
    %275 = vector.broadcast %cst_117 : f32 to vector<1x16x16xf32>
    %276 = arith.minimumf %274, %275 : vector<1x16x16xf32>
    %277 = math.exp %276 : vector<1x16x16xf32>
    %cst_118 = arith.constant 2.000000e+00 : f32
    %278 = vector.broadcast %cst_118 : f32 to vector<1x16x16xf32>
    %279 = arith.addf %277, %278 : vector<1x16x16xf32>
    %280 = arith.mulf %277, %279 : vector<1x16x16xf32>
    %cst_119 = arith.constant 2.000000e+00 : f32
    %281 = vector.broadcast %cst_119 : f32 to vector<1x16x16xf32>
    %282 = arith.addf %280, %281 : vector<1x16x16xf32>
    %283 = arith.divf %280, %282 : vector<1x16x16xf32>
    %284 = arith.mulf %274, %283 : vector<1x16x16xf32>
    %c0_120 = arith.constant 0 : index
    %c0_121 = arith.constant 0 : index
    %c0_122 = arith.constant 0 : index
    %285 = vector.load %arg13[%c0_120, %c0_121, %c0_122] : memref<1x16x16xf32, #tpu.memory_space<vmem>>, vector<1x16x16xf32>
    tpu.vector_store %arg13[%c0_120, %c0_121, %c0_122], %284 {strides = array<i32>} : memref<1x16x16xf32, #tpu.memory_space<vmem>>, vector<1x16x16xf32>,
    return
  }
  func.func @transform_0(%arg0: i32) -> (i32, i32, i32) {
    %c0_i32 = arith.constant 0 : i32
    %c0_i32_0 = arith.constant 0 : i32
    %c0_i32_1 = arith.constant 0 : i32
    return %arg0, %c0_i32, %c0_i32_0 : i32, i32, i32
  }
  func.func @transform_1(%arg0: i32) -> (i32, i32, i32) {
    %c0_i32 = arith.constant 0 : i32
    %c0_i32_0 = arith.constant 0 : i32
    %c0_i32_1 = arith.constant 0 : i32
    return %arg0, %c0_i32, %c0_i32_0 : i32, i32, i32
  }
  func.func @transform_2(%arg0: i32) -> (i32, i32, i32) {
    %c0_i32 = arith.constant 0 : i32
    %c0_i32_0 = arith.constant 0 : i32
    %c0_i32_1 = arith.constant 0 : i32
    %c0_i32_2 = arith.constant 0 : i32
    return %c0_i32, %c0_i32_0, %c0_i32_1 : i32, i32, i32
  }
  func.func @transform_3(%arg0: i32) -> (i32, i32) {
    %c0_i32 = arith.constant 0 : i32
    %c0_i32_0 = arith.constant 0 : i32
    %c0_i32_1 = arith.constant 0 : i32
    return %c0_i32, %c0_i32_0 : i32, i32
  }
  func.func @transform_4(%arg0: i32) -> (i32, i32, i32) {
    %c0_i32 = arith.constant 0 : i32
    %c0_i32_0 = arith.constant 0 : i32
    %c0_i32_1 = arith.constant 0 : i32
    %c0_i32_2 = arith.constant 0 : i32
    return %c0_i32, %c0_i32_0, %c0_i32_1 : i32, i32, i32
  }
  func.func @transform_5(%arg0: i32) -> (i32, i32) {
    %c0_i32 = arith.constant 0 : i32
    %c0_i32_0 = arith.constant 0 : i32
    %c0_i32_1 = arith.constant 0 : i32
    return %c0_i32, %c0_i32_0 : i32, i32
  }
  func.func @transform_6(%arg0: i32) -> (i32, i32) {
    %c0_i32 = arith.constant 0 : i32
    %c0_i32_0 = arith.constant 0 : i32
    %c0_i32_1 = arith.constant 0 : i32
    return %c0_i32, %c0_i32_0 : i32, i32
  }
  func.func @transform_7(%arg0: i32) -> (i32, i32, i32) {
    %c0_i32 = arith.constant 0 : i32
    %c0_i32_0 = arith.constant 0 : i32
    %c0_i32_1 = arith.constant 0 : i32
    %c0_i32_2 = arith.constant 0 : i32
    return %c0_i32, %c0_i32_0, %c0_i32_1 : i32, i32, i32
  }
  func.func @transform_8(%arg0: i32) -> (i32, i32) {
    %c0_i32 = arith.constant 0 : i32
    %c0_i32_0 = arith.constant 0 : i32
    %c0_i32_1 = arith.constant 0 : i32
    return %c0_i32, %c0_i32_0 : i32, i32
  }
  func.func @transform_9(%arg0: i32) -> (i32, i32, i32) {
    %c0_i32 = arith.constant 0 : i32
    %c0_i32_0 = arith.constant 0 : i32
    %c0_i32_1 = arith.constant 0 : i32
    %c0_i32_2 = arith.constant 0 : i32
    return %c0_i32, %c0_i32_0, %c0_i32_1 : i32, i32, i32
  }
  func.func @transform_10(%arg0: i32) -> (i32, i32) {
    %c0_i32 = arith.constant 0 : i32
    %c0_i32_0 = arith.constant 0 : i32
    %c0_i32_1 = arith.constant 0 : i32
    return %c0_i32, %c0_i32_0 : i32, i32
  }
  func.func @transform_11(%arg0: i32) -> (i32, i32) {
    %c0_i32 = arith.constant 0 : i32
    %c0_i32_0 = arith.constant 0 : i32
    %c0_i32_1 = arith.constant 0 : i32
    return %c0_i32, %c0_i32_0 : i32, i32
  }
  func.func @transform_12(%arg0: i32) -> (i32, i32, i32) {
    %c0_i32 = arith.constant 0 : i32
    %c0_i32_0 = arith.constant 0 : i32
    %c0_i32_1 = arith.constant 0 : i32
    return %arg0, %c0_i32, %c0_i32_0 : i32, i32, i32
  }
}

</mosaic_0001>

<bundles_post_ra>
// kernel: mode_subnet_2conv.1
= control target key start
LH: loop header
LB: loop body
LE: loop exit
PB: predicated region body
PF: predicated region fallthrough
CT: control target
= control target key end

     0   :  { %s3081_s0 = inlined_call_operand.vmem [shape: f32[2,1,4], index: 0, kind: input, shape index: {}]   ;;  %s3082_s1 = inlined_call_operand.vmem [shape: f32[2,16,8], index: 1, kind: input, shape index: {}]   ;;  %s3083_s2 = inlined_call_operand.vmem [shape: f32[5,4,16], index: 2, kind: input, shape index: {}]   ;;  %s3084_s3 = inlined_call_operand.vmem [shape: f32[5,16], index: 3, kind: input, shape index: {}]   ;;  %s3085_s4 = inlined_call_operand.vmem [shape: f32[5,40,16], index: 4, kind: input, shape index: {}]   ;;  %s3086_s5 = inlined_call_operand.vmem [shape: f32[1,16], index: 5, kind: input, shape index: {}]   ;;  %s3087_s6 = inlined_call_operand.vmem [shape: f32[1,16], index: 6, kind: input, shape index: {}]   ;;  %s3088_s7 = inlined_call_operand.vmem [shape: f32[5,4,16], index: 7, kind: input, shape index: {}]   ;;  %s3089_s8 = inlined_call_operand.vmem [shape: f32[5,16], index: 8, kind: input, shape index: {}]   ;;  %s3090_s9 = inlined_call_operand.vmem [shape: f32[5,80,16], index: 9, kind: input, shape index: {}]   ;;  %s3091_s10 = inlined_call_operand.vmem [shape: f32[1,16], index: 10, kind: input, shape index: {}]   ;;  %s3092_s11 = inlined_call_operand.vmem [shape: f32[1,16], index: 11, kind: input, shape index: {}]   ;;  %s3093_s12 = inlined_call_operand.hbm [shape: f32[2,16,16], index: 12, kind: output, shape index: {}]  }
   0x1   :  { %3097 = sst [smem:[#allocation6_spill]] %s3081_s0 }
   0x2   :  { %17 = vsyncpa [#allocation3], 0 }
   0x3   :  { %19 = vsyncpa [#allocation3 + $0x1], 0  ;;  %s2442_s21 = smov 0   ;;  %s2444_s22 = smov 0  }
   0x4   :  { %s2446_s23 = smov 0   ;;  %s2448_s24 = smov 0  }
   0x5 LB: > { %s2463_s25 = sadd.s32 4294967295, %s2365_s24   ;;  %s1961_s26 = sadd.s32 4294967294, %s2365_s24   ;;  %s2365_s24 = sphi %s2448_s24, %s3109_s24   ;;  %s2361_s23 = sphi %s2446_s23, %s3108_s23   ;;  %s2357_s22 = sphi %s2444_s22, %s3107_s22   ;;  %s2353_s21 = sphi %s2442_s21, %s3106_s21  }
   0x6   : > { %s2467_s27 = sadd.s32 1, %s2365_s24   ;;  %s294_s28 = sadd.s32 1, %s2361_s23 }
   0x7   : > { %s291_s29 = ssub.s32 %s2365_s24, %s2467_s27  ;;  %p304_p0 = scmp.ne.s32.totalorder %s2361_s23, %s2357_s22 }
   0x8   : > { %p292_p1 = scmp.eq.s32.totalorder %s291_s29, 0  ;;  %p305_p2 = scmp.eq.s32.totalorder %s2463_s25, 1 }
   0x9   : > { %p310_p3 = scmp.ne.s32.totalorder %s2357_s22, %s2353_s21  ;;  %p311_p4 = scmp.eq.s32.totalorder %s1961_s26, 1 }
   0xa   : > { %s2478_s30 = scalar_select %p292_p1, %s2361_s23, %s294_s28  }
   0xb   : > { %p2480_p5 = por %p305_p2, %p304_p0  ;;  %p2484_p6 = por %p311_p4, %p310_p3 }
   0xc   : > { %3098 = sst [smem:[#allocation5_spill]] %s2478_s30  ;;  %p1964_p7 = scmp.ge.s32.totalorder %s2365_s24, 1 }
   0xd   : > { %p373_p8 = scmp.lt.s32.totalorder %s2365_s24, 3 }
   0xf   : > { %p374_p9 = pnand %p1964_p7, %p373_p8 }
  0x10   : > { %p418_p10 = scmp.lt.s32.totalorder (!%p374_p9), %s2463_s25, 1  ;;  %s3101_s0 = sld [smem:[#allocation6_spill]] (!%p374_p9) }
  0x11   : > { %377 = sbr.rel (%p374_p9) target bundleno = 1055 (0x41f), region = 68  ;;  %s3094_s28 = smov (!%p374_p9), 8  }
  0x12   : > { %s3095_s15 = smov (!%p374_p9), 16   ;;  %s3096_s16 = smov (!%p374_p9), 32  }
  0x13   : > { %s3102_s18 = smov (!%p374_p9), 32   ;;  %s2374_s19 = smov (!%p374_p9), 48  }
  0x14   : > { %s2375_s26 = smov (!%p374_p9), [#allocation2]  }
  0x16   : > { %v430_v0 = vld [vmem:[%s3083_s2] sm:$0xf]  ;;  %vm436_vm0 = vcmask 1043456   ;;  %v2367_v1 = vmov 0.0   ;;  %vm2368_vm1 = vmmov 0   ;;  %s419_s17 = scalar_select %p418_p10, %s2463_s25, 1 }
  0x17   : > { %2099 = vmatprep.subr.mxu1 %v2367_v1  ;;  %2101 = vmatprep.mubr.msk.f32.mxu1 %vm2368_vm1, %v2367_v1  ;;  %vm432_vm2 = vcmask 31744   ;;  %v1970_v2 = vld [vmem:[%s3083_s2 + $0x4] sm:$0xf]  ;;  %v1973_v8 = vld [vmem:[%s3083_s2 + $0x8] sm:$0xf]  ;;  %vm947_vm3 = vcmask 1046528  }
  0x18   : > { %2100 = vmatpush3.msk.msra.mxu1 %vm436_vm0, %v430_v0  ;;  %2134 = vmatprep.subr.mxu0 %v2367_v1  ;;  %s420_s20 = scalar_lea.vmem %s3101_s0, %s419_s17  ;;  %s2067_s29 = sshll.u32 %s419_s17, 4  ;;  %vm971_vm4 = vcmask 1044480   ;;  %vm959_vm5 = vcmask 1045504   ;;  %v1976_v21 = vld [vmem:[%s3083_s2 + $0xc] sm:$0xf]  ;;  %vm994_vm6 = vcmask 64512  }
  0x19   : > { %2104 = vmatprep.subr.mxu1 %v2367_v1  ;;  %2136 = vmatprep.mubr.msk.f32.mxu0 %vm2368_vm1, %v2367_v1  ;;  %v2509_v3 = vld [vmem:[%s420_s20] sm:$0x1]  ;;  %s425_s30 = scalar_lea.vmem %s3082_s1, %s2067_s29  ;;  %v1979_v32 = vld [vmem:[%s3083_s2 + $0x10] sm:$0xf]  ;;  %s2370_s29 = smov 24   ;;  %vm997_vm7 = vcmask 130048  }
  0x1a   : > { %2102 = vmatmul.mubr.msk.f32.vlgmr.msra.gmra.mxu1 %vm432_vm2, %v2509_v3  ;;  %v428_v4 = vld [vmem:[%s425_s30] sm:$0xff]  ;;  %v429_v5 = vld [vmem:[%s425_s30 + $0x8] sm:$0xff]  ;;  %vm1000_vm8 = vcmask 195584   ;;  %vm1003_vm9 = vcmask 261120   ;;  %vm1010_vm10 = vcmask 326656   ;;  %s3103_s30 = smov 16  }
  0x1b   : > { %2105 = vmatpush3.msk.msra.mxu1 %vm436_vm0, %v1970_v2  ;;  %2106 = vmatprep.mubr.msk.f32.mxu1 %vm2368_vm1, %v2367_v1  ;;  %v940_v6 = vrot.slane %v428_v4, 4  ;;  %v941_v7 = vrot.slane %v429_v5, 4  ;;  %v1123_v37 = vld [vmem:[%s3088_s7] sm:$0xf]  ;;  %v2007_v38 = vld [vmem:[%s3088_s7 + $0x4] sm:$0xf] }
  0x1c   : > { %2109 = vmatprep.subr.mxu1 %v2367_v1  ;;  %2135 = vmatpush3.msk.msra.mxu0 %vm436_vm0, %v1123_v37  ;;  %v2010_v39 = vld [vmem:[%s3088_s7 + $0x8] sm:$0xf]  ;;  %v2013_v40 = vld [vmem:[%s3088_s7 + $0xc] sm:$0xf]  ;;  %v512_v44 = vld [vmem:[%s3084_s3 + $0x1] sm:$0x1] }
  0x1d   : > { %v2524_v9 = vsel %vm436_vm0, %v940_v6, %v941_v7  ;;  %v2527_v10 = vsel %vm436_vm0, 0.0, %v940_v6  ;;  %v951_v11 = vrot.slane %v941_v7, 1  ;;  %v975_v12 = vrot.slane %v941_v7, 3  ;;  %2137 = vmatmul.mubr.msk.f32.vlgmr.msra.gmra.mxu0 %vm432_vm2, %v2509_v3  ;;  %2139 = vmatprep.subr.mxu0 %v2367_v1  ;;  %v431_v46 = vld [vmem:[%s3084_s3] sm:$0x1] }
  0x1e   : > { %2107 = vmatmul.mubr.msk.f32.vlgmr.msra.gmra.mxu1 %vm432_vm2, %v2509_v3  ;;  %v948_v13 = vrot.slane %v2527_v10, 1  ;;  %v949_v14 = vrot.slane %v2524_v9, 1  ;;  %v972_v15 = vrot.slane %v2527_v10, 3  ;;  %v973_v16 = vrot.slane %v2524_v9, 3  ;;  %2140 = vmatpush3.msk.msra.mxu0 %vm436_vm0, %v2007_v38  ;;  %v588_v47 = vld [vmem:[%s3084_s3 + $0x2] sm:$0x1] }
  0x1f   : > { %2110 = vmatpush3.msk.msra.mxu1 %vm436_vm0, %v1973_v8  ;;  %2111 = vmatprep.mubr.msk.f32.mxu1 %vm2368_vm1, %v2367_v1  ;;  %v960_v17 = vrot.slane %v2527_v10, 2  ;;  %v961_v18 = vrot.slane %v2524_v9, 2  ;;  %v963_v19 = vrot.slane %v941_v7, 2  ;;  %v983_v20 = vrot.slane %v2527_v10, 4  ;;  %v664_v51 = vld [vmem:[%s3084_s3 + $0x3] sm:$0x1] }
  0x20   : > { %2114 = vmatprep.subr.mxu1 %v2367_v1  ;;  %v950_v22 = vsel %vm947_vm3, %v948_v13, %v949_v14  ;;  %v952_v23 = vsel %vm947_vm3, %v949_v14, %v951_v11  ;;  %v974_v24 = vsel %vm971_vm4, %v972_v15, %v973_v16  ;;  %v976_v25 = vsel %vm971_vm4, %v973_v16, %v975_v12  ;;  %v740_v58 = vld [vmem:[%s3084_s3 + $0x4] sm:$0x1] }
  0x21   : > { %v2221_v26 = vpack.i.bf16 %v952_v23, %v950_v22  ;;  %v2231_v27 = vpack.i.bf16 %v976_v25, %v974_v24  ;;  %v962_v28 = vsel %vm959_vm5, %v960_v17, %v961_v18  ;;  %v964_v29 = vsel %vm959_vm5, %v961_v18, %v963_v19  ;;  %2141 = vmatprep.mubr.msk.f32.mxu0 %vm2368_vm1, %v2367_v1 }
  0x22   : > { %2112 = vmatmul.mubr.msk.f32.vlgmr.msra.gmra.mxu1 %vm432_vm2, %v2509_v3  ;;  %v984_v30 = vrot.slane %v2524_v9, 4  ;;  %v986_v31 = vrot.slane %v941_v7, 4  ;;  %v2226_v33 = vpack.i.bf16 %v964_v29, %v962_v28  ;;  %2144 = vmatprep.subr.mxu0 %v2367_v1  ;;  %v845_v24 = vlaneseq }
  0x23   : > { %2115 = vmatpush3.msk.msra.mxu1 %vm436_vm0, %v1976_v21  ;;  %2116 = vmatprep.mubr.msk.f32.mxu1 %vm2368_vm1, %v2367_v1  ;;  %vm1753_vm11 = vcmask 392192   ;;  %vm1756_vm12 = vcmask 523264   ;;  %vm1765_vm13 = vcmask 654336  }
  0x24   : > { %2119 = vmatprep.subr.mxu1 %v2367_v1  ;;  %2222 = vrot.lane.b32.xlu0 %v2221_v26, %s3094_s28  ;;  %v985_v34 = vsel %vm436_vm0, %v983_v20, %v984_v30  ;;  %v987_v35 = vsel %vm436_vm0, %v984_v30, %v986_v31  ;;  %v846_v25 = vshrl.u32 %v845_v24, 7  ;;  %s2373_s28 = smov 64  }
  0x25   : > { %2232 = vrot.lane.b32.xlu1 %v2231_v27, %s2370_s29  ;;  %v2236_v36 = vpack.i.bf16 %v987_v35, %v985_v34  ;;  %2142 = vmatmul.mubr.msk.f32.vlgmr.msra.gmra.mxu0 %vm432_vm2, %v2509_v3  ;;  %v844_v35 = vld [vmem:[%s3085_s4 + $0x20] sm:$0xff]  ;;  %s415_s29 = sand.u32 1, %s2357_s22  }
  0x26   : > { %2117 = vmatmul.mubr.msk.f32.vlgmr.msra.gmra.mxu1 %vm432_vm2, %v2509_v3  ;;  %2145 = vmatpush3.msk.msra.mxu0 %vm436_vm0, %v2010_v39  ;;  %v2629_v27 = vsub.s32 0, %v846_v25  ;;  %s1965_s17 = sshll.u32 %s415_s29, 4 }
  0x27   : > { %2120 = vmatpush3.msk.msra.mxu1 %vm436_vm0, %v1979_v32  ;;  %2121 = vmatprep.mubr.msk.f32.mxu1 %vm2368_vm1, %v2367_v1 }
  0x28   : > { %2227 = vrot.lane.b32.xlu0 %v2226_v33, %s3095_s15  ;;  %2124 = vmatprep.subr.bf16.mxu1 %v2367_v1 }
  0x29   : > { %2237 = vrot.lane.b32.xlu1 %v2236_v36, %s3096_s16  ;;  %2146 = vmatprep.mubr.msk.f32.mxu0 %vm2368_vm1, %v2367_v1  ;;  %v1986_v36 = vld [vmem:[%s3085_s4 + $0x48] sm:$0xff] }
  0x2a   : > { %2122 = vmatmul.mubr.msk.f32.vlgmr.msra.gmra.mxu1 %vm432_vm2, %v2509_v3  ;;  %2149 = vmatprep.subr.mxu0 %v2367_v1 }
  0x2b   : > { %2130 = vmatprep.mubr.msk.bf16.mxu1 %vm2368_vm1, %v2367_v1  ;;  %2147 = vmatmul.mubr.msk.f32.vlgmr.msra.gmra.mxu0 %vm432_vm2, %v2509_v3 }
  0x2c   : > { %2150 = vmatpush3.msk.msra.mxu0 %vm436_vm0, %v2013_v40  ;;  %2151 = vmatprep.mubr.msk.f32.mxu0 %vm2368_vm1, %v2367_v1 }
  0x2d   : > { %2159 = vmatprep.subr.bf16.mxu0 %v2367_v1 }
  0x2f   : > { %2152 = vmatmul.mubr.msk.f32.vlgmr.msra.gmra.mxu0 %vm432_vm2, %v2509_v3 }
  0x30   : > { %2169 = vmatprep.mubr.msk.bf16.mxu0 %vm2368_vm1, %v2367_v1 }
  0x96   : > { %v2627_v26 = vpop.permute.xlu0 %2222 }
  0x97   : > { %v2224_v29 = vunpack.i.l.bf16 %v2627_v26 }
  0x9a   : > { %v2632_v34 = vpop.permute.xlu0 %2227 }
  0xda   : > { %v506_v41 = vpop.f32.mrf.mxu1 }
  0xdb   : > { %v507_v52 = vadd.f32 %v506_v41, %v431_v46  ;;  %v1991_v46 = vld [vmem:[%s3085_s4 + $0x70] sm:$0xff] }
  0xdc   : > { %v2103_v42 = vpop.f32.mrf.mxu1 }
  0xdd   : > { %v842_v42 = vld [vmem:[%s3085_s4 + $0x10] sm:$0xff] }
  0xde   : > { %v582_v43 = vpop.f32.mrf.mxu1 }
  0xdf   : > { %v583_v49 = vadd.f32 %v582_v43, %v512_v44  ;;  %v843_v43 = vld [vmem:[%s3085_s4 + $0x18] sm:$0xff] }
  0xe0   : > { %v2108_v45 = vpop.f32.mrf.mxu1  ;;  %v1984_v44 = vld [vmem:[%s3085_s4 + $0x38] sm:$0xff] }
  0xe1   : > { %v814_v55 = vmax.f32 %v507_v52, %v583_v49  ;;  %v2225_v45 = vunpack.i.h.bf16 %v2627_v26 }
  0xe2   : > { %v658_v48 = vpop.f32.mrf.mxu1 }
  0xe3   : > { %v659_v53 = vadd.f32 %v658_v48, %v588_v47  ;;  %v2001_v48 = vld [vmem:[%s3085_s4 + $0xc0] sm:$0xff] }
  0xe4   : > { %v2113_v50 = vpop.f32.mrf.mxu1 }
  0xe5   : > { %v815_v59 = vmax.f32 %v814_v55, %v659_v53  ;;  %v2668_v50 = vsel %vm994_vm6, %v2527_v10, %v2224_v29  ;;  %v1989_v55 = vld [vmem:[%s3085_s4 + $0x60] sm:$0xff]  ;;  %v2229_v10 = vunpack.i.l.bf16 %v2632_v34 }
  0xe6   : > { %v734_v54 = vpop.f32.mrf.mxu1 }
  0xe7   : > { %v735_v56 = vadd.f32 %v734_v54, %v664_v51  ;;  %v2230_v51 = vunpack.i.h.bf16 %v2632_v34  ;;  %v1996_v54 = vld [vmem:[%s3085_s4 + $0x98] sm:$0xff]  ;;  %v998_v26 = vsel %vm997_vm7, %v2668_v50, %v2229_v10 }
  0xe8   : > { %v2118_v57 = vpop.f32.mrf.mxu1 }
  0xe9   : > { %v816_v61 = vmax.f32 %v815_v59, %v735_v56 }
  0xea   : > { %v810_v60 = vpop.f32.mrf.mxu1 }
  0xeb   : > { %v811_v62 = vadd.f32 %v810_v60, %v740_v58  ;;  %v1994_v60 = vld [vmem:[%s3085_s4 + $0x88] sm:$0xff] }
  0xec   : > { %v2123_v63 = vpop.f32.mrf.mxu1 }
  0xed   : > { %v817_v0 = vmax.f32 %v816_v61, %v811_v62  ;;  %v840_v61 = vld [vmem:[%s3085_s4] sm:$0xff] }
  0xef   : > { %v818_v2 = vsub.f32 %v507_v52, %v817_v0  ;;  %v821_v4 = vsub.f32 %v583_v49, %v817_v0  ;;  %v824_v5 = vsub.f32 %v659_v53, %v817_v0  ;;  %v827_v6 = vsub.f32 %v735_v56, %v817_v0  ;;  %v1985_v49 = vld [vmem:[%s3085_s4 + $0x40] sm:$0xff]  ;;  %v1990_v56 = vld [vmem:[%s3085_s4 + $0x68] sm:$0xff] }
  0xf0   : > { %v830_v12 = vsub.f32 %v811_v62, %v817_v0 }
  0xf1   : > { %v819_v7 = vmul.f32 1.442695, %v818_v2  ;;  %v822_v8 = vmul.f32 1.442695, %v821_v4  ;;  %v825_v11 = vmul.f32 1.442695, %v824_v5 }
  0xf2   : > { %v828_v13 = vmul.f32 1.442695, %v827_v6  ;;  %v831_v14 = vmul.f32 1.442695, %v830_v12  ;;  %v841_v4 = vld [vmem:[%s3085_s4 + $0x8] sm:$0xff]  ;;  %v1983_v6 = vld [vmem:[%s3085_s4 + $0x30] sm:$0xff] }
  0xf3   : > { %2261 = vpow2.f32 %v819_v7  ;;  %v1982_v5 = vld [vmem:[%s3085_s4 + $0x28] sm:$0xff] }
  0xf4   : > { %2263 = vpow2.f32 %v822_v8 }
  0xf5   : > { %2265 = vpow2.f32 %v825_v11 }
  0xf6   : > { %2267 = vpow2.f32 %v828_v13  ;;  %v1995_v13 = vld [vmem:[%s3085_s4 + $0x90] sm:$0xff] }
  0xf7   : > { %2269 = vpow2.f32 %v831_v14  ;;  %v1987_v14 = vld [vmem:[%s3085_s4 + $0x50] sm:$0xff] }
 0x100   : > { %v2262_v15 = vpop.eup %2261 }
 0x101   : > { %v2264_v16 = vpop.eup %2263 }
 0x102   : > { %v833_v17 = vadd.f32 %v2264_v16, %v2262_v15  ;;  %v2266_v18 = vpop.eup %2265 }
 0x103   : > { %v2268_v20 = vpop.eup %2267 }
 0x104   : > { %v834_v19 = vadd.f32 %v2266_v18, %v833_v17  ;;  %v2270_v22 = vpop.eup %2269 }
 0x106   : > { %v835_v21 = vadd.f32 %v2268_v20, %v834_v19  ;;  %v1988_v19 = vld [vmem:[%s3085_s4 + $0x58] sm:$0xff] }
 0x108   : > { %v836_v23 = vadd.f32 %v2270_v22, %v835_v21 }
 0x10a   : > { %2271 = vrcp.f32 %v836_v23  ;;  %v2000_v23 = vld [vmem:[%s3085_s4 + $0xb8] sm:$0xff] }
 0x117   : > { %v2272_v28 = vpop.eup %2271 }
 0x118   : > { %v917_v30 = vmul.f32 %v2272_v28, %v2270_v22  ;;  %v839_v31 = vmul.f32 %v2272_v28, %v2262_v15  ;;  %v854_v32 = vmul.f32 %v2272_v28, %v2264_v16  ;;  %v875_v33 = vmul.f32 %v2272_v28, %v2266_v18  ;;  %v1999_v22 = vld [vmem:[%s3085_s4 + $0xb0] sm:$0xff] }
 0x119   : > { %v896_v37 = vmul.f32 %v2272_v28, %v2268_v20  ;;  %v2233_v20 = vpop.permute.xlu1 %2232 }
 0x11a   : > { %v2641_v38 = vrot.slane %v917_v30, %v2629_v27  ;;  %v848_v39 = vrot.slane %v839_v31, %v2629_v27  ;;  %v864_v40 = vrot.slane %v854_v32, %v2629_v27  ;;  %v885_v41 = vrot.slane %v875_v33, %v2629_v27  ;;  %v1992_v33 = vld [vmem:[%s3085_s4 + $0x78] sm:$0xff] }
 0x11b   : > { %v906_v47 = vrot.slane %v896_v37, %v2629_v27 }
 0x11c   : > { %v853_v52 = vmul.f32 %v848_v39, %v844_v35  ;;  %v869_v53 = vmul.f32 %v1986_v36, %v864_v40  ;;  %v851_v57 = vmul.f32 %v848_v39, %v842_v42  ;;  %v852_v58 = vmul.f32 %v848_v39, %v843_v43  ;;  %v1993_v35 = vld [vmem:[%s3085_s4 + $0x80] sm:$0xff] }
 0x11d   : > { %v867_v59 = vmul.f32 %v1984_v44, %v864_v40  ;;  %v890_v63 = vmul.f32 %v1991_v46, %v885_v41  ;;  %v932_v0 = vmul.f32 %v2001_v48, %v2641_v38  ;;  %v868_v2 = vmul.f32 %v1985_v49, %v864_v40 }
 0x11e   : > { %v874_v62 = vadd.f32 %v869_v53, %v853_v52  ;;  %v911_v7 = vmul.f32 %v1996_v54, %v906_v47  ;;  %v888_v11 = vmul.f32 %v1989_v55, %v885_v41  ;;  %v889_v12 = vmul.f32 %v1990_v56, %v885_v41  ;;  %v1998_v56 = vld [vmem:[%s3085_s4 + $0xa8] sm:$0xff] }
 0x11f   : > { %v872_v8 = vadd.f32 %v867_v59, %v851_v57  ;;  %v873_v16 = vadd.f32 %v868_v2, %v852_v58  ;;  %v909_v17 = vmul.f32 %v1994_v60, %v906_v47  ;;  %v849_v18 = vmul.f32 %v848_v39, %v840_v61  ;;  %v2238_v57 = vpop.permute.xlu1 %2237 }
 0x120   : > { %v895_v15 = vadd.f32 %v890_v63, %v874_v62  ;;  %v850_v24 = vmul.f32 %v848_v39, %v841_v4  ;;  %v865_v25 = vmul.f32 %v1982_v5, %v864_v40  ;;  %v866_v28 = vmul.f32 %v1983_v6, %v864_v40 }
 0x121   : > { %v893_v21 = vadd.f32 %v888_v11, %v872_v8  ;;  %v894_v30 = vadd.f32 %v889_v12, %v873_v16  ;;  %v910_v31 = vmul.f32 %v1995_v13, %v906_v47  ;;  %v886_v32 = vmul.f32 %v1987_v14, %v885_v41  ;;  %v2016_v11 = vld [vmem:[%s3088_s7 + $0x10] sm:$0xf]  ;;  %v1194_v12 = vpop.f32.mrf.mxu0 }
 0x122   : > { %v916_v29 = vadd.f32 %v911_v7, %v895_v15  ;;  %v870_v37 = vadd.f32 %v865_v25, %v849_v18  ;;  %v871_v42 = vadd.f32 %v866_v28, %v850_v24  ;;  %v887_v43 = vmul.f32 %v1988_v19, %v885_v41  ;;  %v1997_v41 = vld [vmem:[%s3085_s4 + $0xa0] sm:$0xff] }
 0x123   : > { %v914_v36 = vadd.f32 %v909_v17, %v893_v21  ;;  %v915_v39 = vadd.f32 %v910_v31, %v894_v30  ;;  %v930_v40 = vmul.f32 %v1999_v22, %v2641_v38  ;;  %v931_v46 = vmul.f32 %v2000_v23, %v2641_v38  ;;  %v2138_v13 = vpop.f32.mrf.mxu0  ;;  %v1200_v21 = vld [vmem:[%s3089_s8 + $0x1] sm:$0x1] }
 0x124   : > { %v937_v44 = vadd.f32 %v932_v0, %v916_v29  ;;  %v891_v48 = vadd.f32 %v886_v32, %v870_v37  ;;  %v892_v49 = vadd.f32 %v887_v43, %v871_v42  ;;  %v907_v52 = vmul.f32 %v1992_v33, %v906_v47  ;;  %v1352_v29 = vld [vmem:[%s3089_s8 + $0x3] sm:$0x1]  ;;  %v1428_v43 = vld [vmem:[%s3089_s8 + $0x4] sm:$0x1] }
 0x125   : > { %v908_v53 = vmul.f32 %v1993_v35, %v906_v47  ;;  %v996_v54 = vsel %vm994_vm6, %v2524_v9, %v2225_v45  ;;  %v935_v58 = vadd.f32 %v930_v40, %v914_v36  ;;  %v936_v59 = vadd.f32 %v931_v46, %v915_v39  ;;  %v1270_v14 = vpop.f32.mrf.mxu0 }
 0x126   : > { %v1009_v55 = vpack.c.bf16 %v937_v44, %v937_v44  ;;  %v912_v60 = vadd.f32 %v907_v52, %v891_v48  ;;  %v2235_v47 = vunpack.i.h.bf16 %v2233_v20  ;;  %v2234_v62 = vunpack.i.l.bf16 %v2233_v20  ;;  %v1124_v20 = vld [vmem:[%s3089_s8] sm:$0x1] }
 0x127   : > { %v913_v61 = vadd.f32 %v908_v53, %v892_v49  ;;  %v999_v45 = vsel %vm997_vm7, %v996_v54, %v2230_v51  ;;  %v928_v63 = vmul.f32 %v1997_v41, %v2641_v38  ;;  %v929_v0 = vmul.f32 %v1998_v56, %v2641_v38  ;;  %v2143_v15 = vpop.f32.mrf.mxu0 }
 0x128   : > { %v1015_v9 = vsel %vm436_vm0, %v1009_v55, 0  ;;  %v2240_v2 = vunpack.i.h.bf16 %v2238_v57  ;;  %v2239_v4 = vunpack.i.l.bf16 %v2238_v57  ;;  %v1008_v5 = vpack.c.bf16 %v936_v59, %v935_v58 }
 0x129   : > { %2125 = vmatpush3.bf16.msra.mxu1 %v1015_v9  ;;  %v933_v6 = vadd.f32 %v928_v63, %v912_v60  ;;  %v934_v7 = vadd.f32 %v929_v0, %v913_v61  ;;  %v1001_v50 = vsel %vm1000_vm8, %v998_v26, %v2234_v62  ;;  %v1002_v10 = vsel %vm1000_vm8, %v999_v45, %v2235_v47  ;;  %v1346_v16 = vpop.f32.mrf.mxu0 }
 0x12a   : > { %2126 = vmatprep.subr.bf16.mxu1 %v2367_v1  ;;  %v1004_v34 = vsel %vm1003_vm9, %v1001_v50, %v2239_v4  ;;  %v1005_v51 = vsel %vm1003_vm9, %v1002_v10, %v2240_v2  ;;  %v1195_v22 = vadd.f32 %v1194_v12, %v1124_v20  ;;  %v1271_v23 = vadd.f32 %v1270_v14, %v1200_v21 }
 0x12b   : > { %v1007_v8 = vpack.c.bf16 %v934_v7, %v933_v6  ;;  %v1006_v38 = vpack.c.bf16 %v1005_v51, %v1004_v34  ;;  %v2148_v17 = vpop.f32.mrf.mxu0 }
 0x12c   : > { %v1502_v24 = vmax.f32 %v1195_v22, %v1271_v23 }
 0x12d   : > { %2127 = vmatpush3.bf16.msra.mxu1 %v1008_v5  ;;  %v1422_v18 = vpop.f32.mrf.mxu0 }
 0x12e   : > { %2128 = vmatprep.subr.bf16.mxu1 %v2367_v1  ;;  %v1423_v32 = vadd.f32 %v1422_v18, %v1352_v29 }
 0x12f   : > { %v2153_v19 = vpop.f32.mrf.mxu0 }
 0x131   : > { %2129 = vmatpush3.bf16.msra.mxu1 %v1007_v8 }
 0x132   : > { %2154 = vmatprep.subr.mxu1 %v2367_v1 }
 0x134   : > { %2131 = vmatmul.mubr.msk.bf16.vlgmr.msra.gmra.mxu1 %vm1010_vm10, %v1006_v38 }
 0x135   : > { %2155 = vmatpush3.msk.msra.mxu1 %vm436_vm0, %v2016_v11  ;;  %2156 = vmatprep.mubr.msk.f32.mxu1 %vm2368_vm1, %v2367_v1 }
 0x13c   : > { %2157 = vmatmul.mubr.msk.f32.vlgmr.msra.gmra.mxu1 %vm432_vm2, %v2509_v3  ;;  %v1276_v3 = vld [vmem:[%s3089_s8 + $0x2] sm:$0x1] }
 0x13d   : > { %v1347_v25 = vadd.f32 %v1346_v16, %v1276_v3 }
 0x13f   : > { %v1503_v31 = vmax.f32 %v1502_v24, %v1347_v25 }
 0x141   : > { %v1504_v44 = vmax.f32 %v1503_v31, %v1423_v32  ;;  %v2027_v31 = vld [vmem:[%s3090_s9 + $0x90] sm:$0xff] }
 0x1f4   : > { %v1051_v28 = vpop.f32.mrf.mxu1 }
 0x1f5   : > { %v1058_v35 = vsel %vm997_vm7, %v1051_v28, 0.0 }
 0x1f6   : > { %v2132_v30 = vpop.f32.mrf.mxu1 }
 0x1f7   : > { %v1537_v30 = vld [vmem:[%s3090_s9 + $0x48] sm:$0xff] }
 0x1f8   : > { %v1054_v33 = vpop.f32.mrf.mxu1 }
 0x1f9   : > { %v1059_v36 = vsel %vm997_vm7, %v1054_v33, 0.0 }
 0x1fa   : > { %v1060_v37 = vadd.f32 %v1059_v36, %v1058_v35  ;;  %v2133_v42 = vpop.f32.mrf.mxu1 }
 0x1fb   : > { %v2037_v42 = vld [vmem:[%s3090_s9 + $0xe0] sm:$0xff] }
 0x1fc   : > { %v1061_v39 = vrot.slane %v1060_v37, 4  ;;  %v1498_v40 = vpop.f32.mrf.mxu1 }
 0x1fd   : > { %v1499_v46 = vadd.f32 %v1498_v40, %v1428_v43  ;;  %v2038_v43 = vld [vmem:[%s3090_s9 + $0xe8] sm:$0xff]  ;;  %v2048_v40 = vld [vmem:[%s3090_s9 + $0x138] sm:$0xff] }
 0x1fe   : > { %v1062_v48 = vadd.f32 %v1061_v39, %v1060_v37  ;;  %v2158_v49 = vpop.f32.mrf.mxu1  ;;  %v2047_v39 = vld [vmem:[%s3090_s9 + $0x130] sm:$0xff] }
 0x1ff   : > { %v1505_v52 = vmax.f32 %v1504_v44, %v1499_v46 }
 0x200   : > { %v1063_v53 = vrot.slane %v1062_v48, 2 }
 0x201   : > { %v1506_v54 = vsub.f32 %v1195_v22, %v1505_v52  ;;  %v1509_v55 = vsub.f32 %v1271_v23, %v1505_v52  ;;  %v1512_v41 = vsub.f32 %v1347_v25, %v1505_v52  ;;  %v1515_v56 = vsub.f32 %v1423_v32, %v1505_v52  ;;  %v2028_v32 = vld [vmem:[%s3090_s9 + $0x98] sm:$0xff] }
 0x202   : > { %v1064_v57 = vadd.f32 %v1063_v53, %v1062_v48  ;;  %v1518_v58 = vsub.f32 %v1499_v46, %v1505_v52  ;;  %v2003_v48 = vld [vmem:[%s3086_s5] ss:$0 sm:$0xff] }
 0x203   : > { %v1507_v59 = vmul.f32 1.442695, %v1506_v54  ;;  %v1510_v60 = vmul.f32 1.442695, %v1509_v55  ;;  %v1513_v61 = vmul.f32 1.442695, %v1512_v41 }
 0x204   : > { %v1065_v47 = vrot.slane %v1064_v57, 1  ;;  %v1516_v62 = vmul.f32 1.442695, %v1515_v56  ;;  %v1519_v9 = vmul.f32 1.442695, %v1518_v58  ;;  %v2057_v54 = vld [vmem:[%s3090_s9 + $0x180] sm:$0xff] }
 0x205   : > { %2273 = vpow2.f32 %v1507_v59  ;;  %v2058_v55 = vld [vmem:[%s3090_s9 + $0x188] sm:$0xff]  ;;  %v1534_v59 = vld [vmem:[%s3090_s9 + $0x30] sm:$0xff] }
 0x206   : > { %v1066_v26 = vadd.f32 %v1065_v47, %v1064_v57  ;;  %2275 = vpow2.f32 %v1510_v60  ;;  %v1535_v60 = vld [vmem:[%s3090_s9 + $0x38] sm:$0xff] }
 0x207   : > { %2277 = vpow2.f32 %v1513_v61  ;;  %v2004_v61 = vld [vmem:[%s3087_s6] ss:$0 sm:$0xff] }
 0x208   : > { %v1068_v45 = vmul.f32 0.0625, %v1066_v26  ;;  %2279 = vpow2.f32 %v1516_v62 }
 0x209   : > { %2281 = vpow2.f32 %v1519_v9 }
 0x20a   : > { %v1069_v63 = vsub.f32 %v1051_v28, %v1068_v45  ;;  %v1070_v0 = vsub.f32 %v1054_v33, %v1068_v45  ;;  %v1536_v28 = vld [vmem:[%s3090_s9 + $0x40] sm:$0xff] }
 0x20b   : > { %v2025_v45 = vld [vmem:[%s3090_s9 + $0x80] sm:$0xff] }
 0x20c   : > { %v1071_v2 = vmul.f32 %v1069_v63, %v1069_v63  ;;  %v1072_v4 = vmul.f32 %v1070_v0, %v1070_v0 }
 0x20e   : > { %v1073_v5 = vsel %vm997_vm7, %v1071_v2, 0.0  ;;  %v1074_v6 = vsel %vm997_vm7, %v1072_v4, 0.0 }
 0x20f   : > { %v1075_v7 = vadd.f32 %v1074_v6, %v1073_v5  ;;  %v2035_v6 = vld [vmem:[%s3090_s9 + $0xd0] sm:$0xff] }
 0x211   : > { %v1076_v50 = vrot.slane %v1075_v7, 4 }
 0x212   : > { %v2274_v10 = vpop.eup %2273 }
 0x213   : > { %v2276_v34 = vpop.eup %2275  ;;  %v1077_v51 = vadd.f32 %v1076_v50, %v1075_v7  ;;  %v2036_v7 = vld [vmem:[%s3090_s9 + $0xd8] sm:$0xff] }
 0x214   : > { %v2278_v8 = vpop.eup %2277  ;;  %v1521_v38 = vadd.f32 %v2276_v34, %v2274_v10 }
 0x215   : > { %v2280_v11 = vpop.eup %2279  ;;  %v1078_v12 = vrot.slane %v1077_v51, 2 }
 0x216   : > { %v1522_v13 = vadd.f32 %v2278_v8, %v1521_v38  ;;  %v2282_v14 = vpop.eup %2281 }
 0x217   : > { %v1079_v15 = vadd.f32 %v1078_v12, %v1077_v51 }
 0x218   : > { %v1523_v16 = vadd.f32 %v2280_v11, %v1522_v13  ;;  %v2045_v13 = vld [vmem:[%s3090_s9 + $0x120] sm:$0xff] }
 0x219   : > { %v1080_v17 = vrot.slane %v1079_v15, 1 }
 0x21a   : > { %v1524_v18 = vadd.f32 %v2282_v14, %v1523_v16 }
 0x21b   : > { %v1081_v19 = vadd.f32 %v1080_v17, %v1079_v15 }
 0x21c   : > { %2283 = vrcp.f32 %v1524_v18 }
 0x21d   : > { %v1082_v20 = vmul.f32 0.0625, %v1081_v19 }
 0x21f   : > { %v1083_v21 = vadd.f32 1e-05, %v1082_v20 }
 0x221   : > { %2285 = vrsqrt.f32 %v1083_v21 }
 0x229   : > { %v2284_v22 = vpop.eup %2283 }
 0x22a   : > { %v1527_v23 = vmul.f32 %v2284_v22, %v2274_v10  ;;  %v1552_v3 = vmul.f32 %v2284_v22, %v2276_v34  ;;  %v1588_v24 = vmul.f32 %v2284_v22, %v2278_v8  ;;  %v1624_v25 = vmul.f32 %v2284_v22, %v2280_v11 }
 0x22b   : > { %v1660_v29 = vmul.f32 %v2284_v22, %v2282_v14  ;;  %v2046_v14 = vld [vmem:[%s3090_s9 + $0x128] sm:$0xff] }
 0x22c   : > { %v2783_v33 = vrot.slane %v1527_v23, %v2629_v27  ;;  %v2786_v35 = vrot.slane %v1552_v3, %v2629_v27  ;;  %v2789_v36 = vrot.slane %v1588_v24, %v2629_v27  ;;  %v2792_v37 = vrot.slane %v1624_v25, %v2629_v27  ;;  %v2055_v23 = vld [vmem:[%s3090_s9 + $0x170] sm:$0xff]  ;;  %v2056_v3 = vld [vmem:[%s3090_s9 + $0x178] sm:$0xff]  ;;  %v1532_v24 = vld [vmem:[%s3090_s9 + $0x20] sm:$0xff] }
 0x22d   : > { %v2801_v44 = vrot.slane %v1660_v29, %v2629_v27 }
 0x22e   : > { %v2286_v46 = vpop.eup %2285  ;;  %v1550_v49 = vmul.f32 %v2783_v33, %v1536_v28  ;;  %v1551_v52 = vmul.f32 %v2783_v33, %v1537_v30  ;;  %v1576_v27 = vmul.f32 %v2027_v31, %v2786_v35  ;;  %v1577_v53 = vmul.f32 %v2028_v32, %v2786_v35  ;;  %v1533_v31 = vld [vmem:[%s3090_s9 + $0x28] sm:$0xff]  ;;  %v2023_v32 = vld [vmem:[%s3090_s9 + $0x70] sm:$0xff] }
 0x22f   : > { %v1085_v41 = vmul.f32 %v2286_v46, %v1069_v63  ;;  %v1086_v56 = vmul.f32 %v2286_v46, %v1070_v0  ;;  %v1612_v57 = vmul.f32 %v2037_v42, %v2789_v36  ;;  %v1613_v58 = vmul.f32 %v2038_v43, %v2789_v36  ;;  %v2026_v63 = vld [vmem:[%s3090_s9 + $0x88] sm:$0xff]  ;;  %v2024_v46 = vld [vmem:[%s3090_s9 + $0x78] sm:$0xff] }
 0x230   : > { %v1586_v47 = vadd.f32 %v1576_v27, %v1550_v49  ;;  %v1587_v62 = vadd.f32 %v1577_v53, %v1551_v52  ;;  %v1648_v26 = vmul.f32 %v2047_v39, %v2792_v37  ;;  %v1649_v9 = vmul.f32 %v2048_v40, %v2792_v37 }
 0x231   : > { %v1094_v0 = vmul.f32 %v2003_v48, %v1085_v41  ;;  %v1095_v2 = vmul.f32 %v2003_v48, %v1086_v56  ;;  %v1684_v4 = vmul.f32 %v2057_v54, %v2801_v44  ;;  %v1685_v5 = vmul.f32 %v2058_v55, %v2801_v44  ;;  %v2033_v48 = vld [vmem:[%s3090_s9 + $0xc0] sm:$0xff]  ;;  %v2034_v54 = vld [vmem:[%s3090_s9 + $0xc8] sm:$0xff]  ;;  %v2043_v55 = vld [vmem:[%s3090_s9 + $0x110] sm:$0xff] }
 0x232   : > { %v1622_v50 = vadd.f32 %v1612_v57, %v1586_v47  ;;  %v1623_v10 = vadd.f32 %v1613_v58, %v1587_v62  ;;  %v1548_v34 = vmul.f32 %v2783_v33, %v1534_v59  ;;  %v1549_v51 = vmul.f32 %v2783_v33, %v1535_v60  ;;  %v2044_v58 = vld [vmem:[%s3090_s9 + $0x118] sm:$0xff]  ;;  %v2053_v59 = vld [vmem:[%s3090_s9 + $0x160] sm:$0xff]  ;;  %v2054_v62 = vld [vmem:[%s3090_s9 + $0x168] sm:$0xff] }
 0x233   : > { %v2851_v8 = vadd.f32 %v2004_v61, %v1094_v0  ;;  %v2853_v38 = vadd.f32 %v2004_v61, %v1095_v2  ;;  %v1574_v11 = vmul.f32 %v2025_v45, %v2786_v35  ;;  %v1575_v12 = vmul.f32 %v2026_v63, %v2786_v35 }
 0x234   : > { %v1658_v15 = vadd.f32 %v1648_v26, %v1622_v50  ;;  %v1659_v16 = vadd.f32 %v1649_v9, %v1623_v10  ;;  %v1610_v17 = vmul.f32 %v2035_v6, %v2789_v36  ;;  %v1611_v18 = vmul.f32 %v2036_v7, %v2789_v36  ;;  %v1530_v26 = vld [vmem:[%s3090_s9 + $0x10] sm:$0xff]  ;;  %v1531_v9 = vld [vmem:[%s3090_s9 + $0x18] sm:$0xff] }
 0x235   : > { %v1105_v19 = vmin.f32 %v2851_v8, 20.0  ;;  %v1106_v20 = vmin.f32 %v2853_v38, 20.0  ;;  %v1584_v21 = vadd.f32 %v1574_v11, %v1548_v34  ;;  %v1585_v22 = vadd.f32 %v1575_v12, %v1549_v51  ;;  %v2031_v6 = vld [vmem:[%s3090_s9 + $0xb0] sm:$0xff]  ;;  %v2032_v51 = vld [vmem:[%s3090_s9 + $0xb8] sm:$0xff]  ;;  %v2041_v11 = vld [vmem:[%s3090_s9 + $0x100] sm:$0xff] }
 0x236   : > { %v1694_v25 = vadd.f32 %v1684_v4, %v1658_v15  ;;  %v1695_v28 = vadd.f32 %v1685_v5, %v1659_v16  ;;  %v1646_v29 = vmul.f32 %v2045_v13, %v2792_v37  ;;  %v1647_v30 = vmul.f32 %v2046_v14, %v2792_v37  ;;  %v2021_v4 = vld [vmem:[%s3090_s9 + $0x60] sm:$0xff]  ;;  %v2022_v5 = vld [vmem:[%s3090_s9 + $0x68] sm:$0xff] }
 0x237   : > { %v1107_v42 = vmul.f32 1.442695, %v1105_v19  ;;  %v1109_v43 = vmul.f32 1.442695, %v1106_v20  ;;  %v1620_v39 = vadd.f32 %v1610_v17, %v1584_v21  ;;  %v1621_v40 = vadd.f32 %v1611_v18, %v1585_v22  ;;  %v2042_v12 = vld [vmem:[%s3090_s9 + $0x108] sm:$0xff]  ;;  %v2051_v17 = vld [vmem:[%s3090_s9 + $0x150] sm:$0xff] }
 0x238   : > { %v1764_v49 = vpack.c.bf16 %v1695_v28, %v1694_v25  ;;  %v1682_v52 = vmul.f32 %v2055_v23, %v2801_v44  ;;  %v1683_v27 = vmul.f32 %v2056_v3, %v2801_v44  ;;  %v1546_v53 = vmul.f32 %v2783_v33, %v1532_v24  ;;  %v2052_v22 = vld [vmem:[%s3090_s9 + $0x158] sm:$0xff]  ;;  %v1528_v23 = vld [vmem:[%s3090_s9] sm:$0xff]  ;;  %v1529_v3 = vld [vmem:[%s3090_s9 + $0x8] sm:$0xff] }
 0x239   : > { %2287 = vpow2.f32 %v1107_v42  ;;  %v1656_v41 = vadd.f32 %v1646_v29, %v1620_v39  ;;  %v1657_v56 = vadd.f32 %v1647_v30, %v1621_v40  ;;  %v1547_v57 = vmul.f32 %v2783_v33, %v1533_v31  ;;  %v2019_v30 = vld [vmem:[%s3090_s9 + $0x50] sm:$0xff]  ;;  %v2020_v39 = vld [vmem:[%s3090_s9 + $0x58] sm:$0xff]  ;;  %v2029_v40 = vld [vmem:[%s3090_s9 + $0xa0] sm:$0xff] }
 0x23a   : > { %2289 = vpow2.f32 %v1109_v43  ;;  %2160 = vmatpush3.bf16.msra.mxu0 %v1764_v49  ;;  %v1572_v60 = vmul.f32 %v2023_v32, %v2786_v35  ;;  %v1573_v61 = vmul.f32 %v2024_v46, %v2786_v35  ;;  %v1608_v47 = vmul.f32 %v2033_v48, %v2789_v36  ;;  %v2030_v46 = vld [vmem:[%s3090_s9 + $0xa8] sm:$0xff] }
 0x23b   : > { %2161 = vmatprep.subr.bf16.mxu0 %v2367_v1  ;;  %v1692_v45 = vadd.f32 %v1682_v52, %v1656_v41  ;;  %v1693_v63 = vadd.f32 %v1683_v27, %v1657_v56  ;;  %v1609_v0 = vmul.f32 %v2034_v54, %v2789_v36  ;;  %v1644_v2 = vmul.f32 %v2043_v55, %v2792_v37  ;;  %v2039_v56 = vld [vmem:[%s3090_s9 + $0xf0] sm:$0xff] }
 0x23c   : > { %v1582_v7 = vadd.f32 %v1572_v60, %v1546_v53  ;;  %v1583_v50 = vadd.f32 %v1573_v61, %v1547_v57  ;;  %v1645_v10 = vmul.f32 %v2044_v58, %v2792_v37  ;;  %v1680_v34 = vmul.f32 %v2053_v59, %v2801_v44  ;;  %v2040_v57 = vld [vmem:[%s3090_s9 + $0xf8] sm:$0xff]  ;;  %v2049_v61 = vld [vmem:[%s3090_s9 + $0x140] sm:$0xff] }
 0x23d   : > { %v1763_v13 = vpack.c.bf16 %v1693_v63, %v1692_v45  ;;  %v1681_v14 = vmul.f32 %v2054_v62, %v2801_v44  ;;  %v1544_v15 = vmul.f32 %v2783_v33, %v1530_v26  ;;  %v1545_v16 = vmul.f32 %v2783_v33, %v1531_v9  ;;  %v2050_v9 = vld [vmem:[%s3090_s9 + $0x148] sm:$0xff] }
 0x23e   : > { %v1618_v18 = vadd.f32 %v1608_v47, %v1582_v7  ;;  %v1619_v19 = vadd.f32 %v1609_v0, %v1583_v50  ;;  %v1570_v20 = vmul.f32 %v2021_v4, %v2786_v35  ;;  %v1571_v21 = vmul.f32 %v2022_v5, %v2786_v35 }
 0x23f   : > { %2162 = vmatpush3.bf16.msra.mxu0 %v1763_v13  ;;  %v1606_v24 = vmul.f32 %v2031_v6, %v2789_v36  ;;  %v1607_v25 = vmul.f32 %v2032_v51, %v2789_v36  ;;  %v1642_v28 = vmul.f32 %v2041_v11, %v2792_v37  ;;  %v1643_v29 = vmul.f32 %v2042_v12, %v2792_v37 }
 0x240   : > { %2163 = vmatprep.subr.bf16.mxu0 %v2367_v1  ;;  %v1654_v31 = vadd.f32 %v1644_v2, %v1618_v18  ;;  %v1655_v32 = vadd.f32 %v1645_v10, %v1619_v19  ;;  %v1580_v42 = vadd.f32 %v1570_v20, %v1544_v15  ;;  %v1581_v43 = vadd.f32 %v1571_v21, %v1545_v16 }
 0x241   : > { %v1678_v48 = vmul.f32 %v2051_v17, %v2801_v44  ;;  %v1679_v49 = vmul.f32 %v2052_v22, %v2801_v44  ;;  %v1542_v52 = vmul.f32 %v2783_v33, %v1528_v23  ;;  %v1543_v27 = vmul.f32 %v2783_v33, %v1529_v3 }
 0x242   : > { %v1690_v53 = vadd.f32 %v1680_v34, %v1654_v31  ;;  %v1691_v54 = vadd.f32 %v1681_v14, %v1655_v32  ;;  %v1616_v55 = vadd.f32 %v1606_v24, %v1580_v42  ;;  %v1617_v41 = vadd.f32 %v1607_v25, %v1581_v43 }
 0x243   : > { %v1568_v58 = vmul.f32 %v2019_v30, %v2786_v35  ;;  %v1569_v59 = vmul.f32 %v2020_v39, %v2786_v35  ;;  %v1604_v60 = vmul.f32 %v2029_v40, %v2789_v36  ;;  %v1605_v33 = vmul.f32 %v2030_v46, %v2789_v36 }
 0x244   : > { %v1762_v47 = vpack.c.bf16 %v1691_v54, %v1690_v53  ;;  %v1652_v62 = vadd.f32 %v1642_v28, %v1616_v55  ;;  %v1653_v26 = vadd.f32 %v1643_v29, %v1617_v41  ;;  %v1640_v0 = vmul.f32 %v2039_v56, %v2792_v37 }
 0x245   : > { %v1578_v45 = vadd.f32 %v1568_v58, %v1542_v52  ;;  %v1579_v63 = vadd.f32 %v1569_v59, %v1543_v27  ;;  %v1641_v35 = vmul.f32 %v2040_v57, %v2792_v37  ;;  %v1676_v5 = vmul.f32 %v2049_v61, %v2801_v44 }
 0x246   : > { %v2288_v2 = vpop.eup %2287  ;;  %2164 = vmatpush3.bf16.msra.mxu0 %v1762_v47  ;;  %v1688_v36 = vadd.f32 %v1678_v48, %v1652_v62  ;;  %v1689_v4 = vadd.f32 %v1679_v49, %v1653_v26  ;;  %v1677_v34 = vmul.f32 %v2050_v9, %v2801_v44 }
 0x247   : > { %v2290_v6 = vpop.eup %2289  ;;  %v1111_v7 = vadd.f32 2.0, %v2288_v2  ;;  %2165 = vmatprep.subr.bf16.mxu0 %v2367_v1  ;;  %v1614_v50 = vadd.f32 %v1604_v60, %v1578_v45  ;;  %v1615_v10 = vadd.f32 %v1605_v33, %v1579_v63 }
 0x248   : > { %v1112_v51 = vadd.f32 2.0, %v2290_v6  ;;  %v1761_v11 = vpack.c.bf16 %v1689_v4, %v1688_v36 }
 0x249   : > { %v1113_v12 = vmul.f32 %v2288_v2, %v1111_v7  ;;  %v1650_v13 = vadd.f32 %v1640_v0, %v1614_v50  ;;  %v1651_v14 = vadd.f32 %v1641_v35, %v1615_v10 }
 0x24a   : > { %v1114_v37 = vmul.f32 %v2290_v6, %v1112_v51  ;;  %2166 = vmatpush3.bf16.msra.mxu0 %v1761_v11 }
 0x24b   : > { %v1115_v15 = vadd.f32 2.0, %v1113_v12  ;;  %2167 = vmatprep.subr.bf16.mxu0 %v2367_v1  ;;  %v1686_v16 = vadd.f32 %v1676_v5, %v1650_v13  ;;  %v1687_v17 = vadd.f32 %v1677_v34, %v1651_v14 }
 0x24c   : > { %v1116_v18 = vadd.f32 2.0, %v1114_v37 }
 0x24d   : > { %2291 = vrcp.f32 %v1115_v15  ;;  %v1760_v19 = vpack.c.bf16 %v1687_v17, %v1686_v16 }
 0x24e   : > { %2293 = vrcp.f32 %v1116_v18 }
 0x24f   : > { %2168 = vmatpush3.bf16.msra.mxu0 %v1760_v19 }
 0x25a   : > { %v2292_v20 = vpop.eup %2291 }
 0x25b   : > { %v2294_v21 = vpop.eup %2293  ;;  %v1118_v44 = vmul.f32 %v2292_v20, %v1113_v12 }
 0x25c   : > { %v1120_v22 = vmul.f32 %v2294_v21, %v1114_v37 }
 0x25d   : > { %v1121_v23 = vmul.f32 %v1118_v44, %v2851_v8 }
 0x25e   : > { %v1122_v3 = vmul.f32 %v1120_v22, %v2853_v38 }
 0x25f   : > { %v1698_v24 = vrot.slane %v1121_v23, 4 }
 0x260   : > { %v1699_v25 = vrot.slane %v1122_v3, 4 }
 0x261   : > { %v1703_v28 = vsel %vm436_vm0, 0.0, %v1698_v24 }
 0x262   : > { %v1700_v1 = vsel %vm436_vm0, %v1698_v24, %v1699_v25  ;;  %v1716_v29 = vrot.slane %v1703_v28, 2  ;;  %v1719_v30 = vrot.slane %v1699_v25, 2  ;;  %v1705_v31 = vrot.slane %v1703_v28, 1 }
 0x263   : > { %v1717_v32 = vrot.slane %v1700_v1, 2  ;;  %v1706_v42 = vrot.slane %v1700_v1, 1  ;;  %v1708_v43 = vrot.slane %v1699_v25, 1  ;;  %v1738_v39 = vrot.slane %v1703_v28, 4 }
 0x264   : > { %v1739_v40 = vrot.slane %v1700_v1, 4  ;;  %v1741_v46 = vrot.slane %v1699_v25, 4  ;;  %v1727_v48 = vrot.slane %v1703_v28, 3  ;;  %v1728_v49 = vrot.slane %v1700_v1, 3 }
 0x265   : > { %v1718_v8 = vsel %vm959_vm5, %v1716_v29, %v1717_v32  ;;  %v1720_v38 = vsel %vm959_vm5, %v1717_v32, %v1719_v30  ;;  %v1707_v52 = vsel %vm947_vm3, %v1705_v31, %v1706_v42  ;;  %v1709_v27 = vsel %vm947_vm3, %v1706_v42, %v1708_v43 }
 0x266   : > { %v2246_v53 = vpack.i.bf16 %v1720_v38, %v1718_v8  ;;  %v2241_v54 = vpack.i.bf16 %v1709_v27, %v1707_v52  ;;  %v1740_v55 = vsel %vm436_vm0, %v1738_v39, %v1739_v40  ;;  %v1742_v41 = vsel %vm436_vm0, %v1739_v40, %v1741_v46  ;;  %v2060_v8 = vld [vmem:[%s3091_s10] ss:$0 sm:$0xff] }
 0x267   : > { %v1729_v56 = vsel %vm971_vm4, %v1727_v48, %v1728_v49  ;;  %v1730_v57 = vrot.slane %v1699_v25, 3  ;;  %v2256_v59 = vpack.i.bf16 %v1742_v41, %v1740_v55  ;;  %v2061_v27 = vld [vmem:[%s3092_s11] ss:$0 sm:$0xff] }
 0x268   : > { %2247 = vrot.lane.b32.xlu1 %v2246_v53, %s3102_s18  ;;  %2242 = vrot.lane.b32.xlu0 %v2241_v54, %s3103_s30  ;;  %s2068_s18 = sshll.u32 %s2463_s25, 8  ;;  %s417_s30 = scalar_lea.vmem [#allocation2], %s1965_s17 }
 0x269   : > { %v1731_v58 = vsel %vm971_vm4, %v1728_v49, %v1730_v57  ;;  %s3034_s16 = scalar_lea.hbm %s3093_s12, %s2068_s18  ;;  %s3040_s25 = scalar_lea.sflag [#allocation3], %s415_s29 }
 0x26a   : > { %v2251_v60 = vpack.i.bf16 %v1731_v58, %v1729_v56  ;;  %s2309_s17 = sshll.u32 %s2375_s26, 4  ;;  %s2310_s17 = int_to_ptr.vmem [resolvable:$false] %s2309_s17 }
 0x26b   : > { %s2311_s18 = scalar_lea.vmem %s2310_s17, 512 }
 0x26c   : > { %2257 = vrot.lane.b32.xlu1 %v2256_v59, %s2373_s28  ;;  %2252 = vrot.lane.b32.xlu0 %v2251_v60, %s2374_s19  ;;  %s1890_s28 = sshll.u32 %s417_s30, 4  ;;  %s3036_s28 = int_to_ptr.vmem [resolvable:$true] %s1890_s28 }
 0x26d   : > { %s2305_s20 = scalar_lea.vmem %s3036_s28, 256  ;;  %p2312_p0 = scmp.lt.s32.totalorder %s3036_s28, %s2310_s17 }
 0x26e   : > { %p2306_p11 = scmp.ne.s32.totalorder %s3036_s28, %s2305_s20  ;;  %p2313_p1 = scmp.lt.s32.totalorder %s2311_s18, %s2305_s20 }
 0x270   : > { %p2307_p12 = pnand %p2306_p11, %p2480_p5  ;;  %p2314_p2 = por %p2313_p1, %p2312_p0 }
 0x272   : > { %p2308_p13 = pneg %p2307_p12 }
 0x274   : > { %p2315_p3 = pnand %p2314_p2, %p2308_p13 }
 0x2da   : > { %v2248_v33 = vpop.permute.xlu1 %2247  ;;  %v2243_v61 = vpop.permute.xlu0 %2242 }
 0x2db   : > { %v2245_v47 = vunpack.i.h.bf16 %v2243_v61  ;;  %v2244_v62 = vunpack.i.l.bf16 %v2243_v61  ;;  %v2250_v26 = vunpack.i.h.bf16 %v2248_v33  ;;  %v2249_v9 = vunpack.i.l.bf16 %v2248_v33 }
 0x2dd   : > { %v1750_v45 = vsel %vm997_vm7, %v1700_v1, %v2245_v47  ;;  %v1749_v63 = vsel %vm997_vm7, %v1703_v28, %v2244_v62 }
 0x2de   : > { %v2258_v0 = vpop.permute.xlu1 %2257  ;;  %v2253_v35 = vpop.permute.xlu0 %2252  ;;  %v1751_v6 = vsel %vm1003_vm9, %v1749_v63, %v2249_v9  ;;  %v1752_v7 = vsel %vm1003_vm9, %v1750_v45, %v2250_v26 }
 0x2df   : > { %v2260_v2 = vunpack.i.h.bf16 %v2258_v0  ;;  %v2259_v36 = vunpack.i.l.bf16 %v2258_v0  ;;  %v2255_v4 = vunpack.i.h.bf16 %v2253_v35  ;;  %v2254_v5 = vunpack.i.l.bf16 %v2253_v35 }
 0x2e1   : > { %v1754_v50 = vsel %vm1753_vm11, %v1751_v6, %v2254_v5  ;;  %v1755_v10 = vsel %vm1753_vm11, %v1752_v7, %v2255_v4 }
 0x2e2   : > { %v1757_v34 = vsel %vm1756_vm12, %v1754_v50, %v2259_v36  ;;  %v1758_v51 = vsel %vm1756_vm12, %v1755_v10, %v2260_v2 }
 0x2e3   : > { %v1759_v11 = vpack.c.bf16 %v1758_v51, %v1757_v34 }
 0x2e5   : > { %2170 = vmatmul.mubr.msk.bf16.vlgmr.msra.gmra.mxu0 %vm1765_vm13, %v1759_v11 }
 0x3a5   : > { %v1803_v12 = vpop.f32.mrf.mxu0 }
 0x3a6   : > { %v1810_v37 = vsel %vm997_vm7, %v1803_v12, 0.0 }
 0x3a7   : > { %v2171_v13 = vpop.f32.mrf.mxu0 }
 0x3a9   : > { %v1806_v14 = vpop.f32.mrf.mxu0 }
 0x3aa   : > { %v1811_v15 = vsel %vm997_vm7, %v1806_v14, 0.0 }
 0x3ab   : > { %v1812_v16 = vadd.f32 %v1811_v15, %v1810_v37  ;;  %v2172_v17 = vpop.f32.mrf.mxu0 }
 0x3ad   : > { %v1813_v18 = vrot.slane %v1812_v16, 4 }
 0x3af   : > { %v1814_v19 = vadd.f32 %v1813_v18, %v1812_v16 }
 0x3b1   : > { %v1815_v20 = vrot.slane %v1814_v19, 2 }
 0x3b3   : > { %v1816_v21 = vadd.f32 %v1815_v20, %v1814_v19 }
 0x3b5   : > { %v1817_v44 = vrot.slane %v1816_v21, 1 }
 0x3b7   : > { %v1818_v22 = vadd.f32 %v1817_v44, %v1816_v21 }
 0x3b9   : > { %v1819_v23 = vmul.f32 0.0625, %v1818_v22 }
 0x3bb   : > { %v1820_v3 = vsub.f32 %v1803_v12, %v1819_v23  ;;  %v1821_v24 = vsub.f32 %v1806_v14, %v1819_v23 }
 0x3bd   : > { %v1822_v25 = vmul.f32 %v1820_v3, %v1820_v3  ;;  %v1823_v28 = vmul.f32 %v1821_v24, %v1821_v24 }
 0x3bf   : > { %v1824_v1 = vsel %vm997_vm7, %v1822_v25, 0.0  ;;  %v1825_v29 = vsel %vm997_vm7, %v1823_v28, 0.0 }
 0x3c0   : > { %v1826_v30 = vadd.f32 %v1825_v29, %v1824_v1 }
 0x3c2   : > { %v1827_v31 = vrot.slane %v1826_v30, 4 }
 0x3c4   : > { %v1828_v32 = vadd.f32 %v1827_v31, %v1826_v30 }
 0x3c6   : > { %v1829_v42 = vrot.slane %v1828_v32, 2 }
 0x3c8   : > { %v1830_v43 = vadd.f32 %v1829_v42, %v1828_v32 }
 0x3ca   : > { %v1831_v39 = vrot.slane %v1830_v43, 1 }
 0x3cc   : > { %v1832_v40 = vadd.f32 %v1831_v39, %v1830_v43 }
 0x3ce   : > { %v1833_v46 = vmul.f32 0.0625, %v1832_v40 }
 0x3d0   : > { %v1834_v48 = vadd.f32 1e-05, %v1833_v46 }
 0x3d2   : > { %2295 = vrsqrt.f32 %v1834_v48 }
 0x3df   : > { %v2296_v49 = vpop.eup %2295 }
 0x3e0   : > { %v1836_v38 = vmul.f32 %v2296_v49, %v1820_v3  ;;  %v1837_v52 = vmul.f32 %v2296_v49, %v1821_v24 }
 0x3e2   : > { %v1845_v53 = vmul.f32 %v2060_v8, %v1836_v38  ;;  %v1846_v54 = vmul.f32 %v2060_v8, %v1837_v52 }
 0x3e4   : > { %v1854_v55 = vadd.f32 %v2061_v27, %v1845_v53  ;;  %v1855_v41 = vadd.f32 %v2061_v27, %v1846_v54 }
 0x3e6   : > { %v1856_v56 = vmin.f32 %v1854_v55, 20.0  ;;  %v1857_v57 = vmin.f32 %v1855_v41, 20.0 }
 0x3e8   : > { %v1858_v58 = vmul.f32 1.442695, %v1856_v56  ;;  %v1860_v59 = vmul.f32 1.442695, %v1857_v57 }
 0x3ea   : > { %2297 = vpow2.f32 %v1858_v58 }
 0x3eb   : > { %2299 = vpow2.f32 %v1860_v59 }
 0x3f7   : > { %v2298_v60 = vpop.eup %2297 }
 0x3f8   : > { %v2300_v33 = vpop.eup %2299  ;;  %v1862_v61 = vadd.f32 2.0, %v2298_v60 }
 0x3f9   : > { %v1863_v47 = vadd.f32 2.0, %v2300_v33 }
 0x3fa   : > { %v1864_v62 = vmul.f32 %v2298_v60, %v1862_v61 }
 0x3fb   : > { %v1865_v26 = vmul.f32 %v2300_v33, %v1863_v47 }
 0x3fc   : > { %v1866_v9 = vadd.f32 2.0, %v1864_v62 }
 0x3fd   : > { %v1867_v45 = vadd.f32 2.0, %v1865_v26 }
 0x3fe   : > { %2301 = vrcp.f32 %v1866_v9 }
 0x3ff   : > { %2303 = vrcp.f32 %v1867_v45 }
 0x40b   : > { %v2302_v63 = vpop.eup %2301 }
 0x40c   : > { %v2304_v0 = vpop.eup %2303  ;;  %v1869_v35 = vmul.f32 %v2302_v63, %v1864_v62 }
 0x40d   : > { %v1871_v2 = vmul.f32 %v2304_v0, %v1865_v26 }
 0x40e   : > { %v1872_v36 = vmul.f32 %v1869_v35, %v1854_v55 }
 0x40f   : > { %v1873_v4 = vmul.f32 %v1871_v2, %v1855_v41 }
 0x410   : > { %1874 = vst.msk [vmem:[%s417_s30] sm:$0xff] %vm997_vm7, %v1872_v36 }
 0x411   : > { %1875 = vst.msk [vmem:[%s417_s30 + $0x8] sm:$0xff] %vm997_vm7, %v1873_v4 }
 0x412   : > { %2318 = shalt.err (!%p2315_p3)
}
 0x413   : > { %s2319_s29 = scalar_lea.hbm %s3034_s16, 256  ;;  %s2323_s15 = scalar_lea.hbm %s3093_s12, 512 }
 0x414   : > { %p2320_p4 = scmp.ne.s32.totalorder %s3034_s16, %s2319_s29  ;;  %p2324_p9 = scmp.lt.s32.totalorder %s3034_s16, %s3093_s12 }
 0x415   : > { %p2325_p10 = scmp.lt.s32.totalorder %s2323_s15, %s2319_s29 }
 0x416   : > { %p2321_p7 = pnand %p2320_p4, %p2480_p5 }
 0x417   : > { %p2326_p11 = por %p2325_p10, %p2324_p9 }
 0x418   : > { %p2322_p8 = pneg %p2321_p7 }
 0x41a   : > { %p2327_p12 = pnand %p2326_p11, %p2322_p8 }
 0x41c   : > { %2330 = shalt.err (!%p2327_p12)
}
 0x41d   : > { %s2376_s20 = smov 128   ;;  %s3104_s17 = smov 8  }
 0x41e   : > { %2173 = dma.vmem_to_hbm [thread:$0]  (%p2480_p5), %s3036_s28, 256, %s3034_s16, %s3040_s25, %s2376_s20, %s2376_s20, %s3104_s17  }
 0x41f PF: > { %p2179_p13 = scmp.ge.s32.totalorder %s2365_s24, 2  ;;  %s1905_s18 = sand.u32 1, %s2353_s21  }
 0x420   : > { %s1906_s0 = scalar_lea.sflag [#allocation3], %s1905_s18 }
 0x421   : > { %p2176_p0 = pnand %p2179_p13, %p2484_p6 }
 0x423   : > { %p2177_p1 = pneg %p2176_p0 }
 0x425   : > { %2348 = dma.done.wait (%p2177_p1), %s1906_s0, 256  }
 0x426   : > { %2350 = vsyncadd (%p2177_p1), %s1906_s0, 4294967040  ;;  %s3105_s13 = sld [smem:[#allocation5_spill]]  ;;  %p22_p2 = scmp.ge.s32.totalorder %s2467_s27, 4  }
 0x427   : > { %s3106_s21 = smov %s2357_s22  ;;  %s3107_s22 = smov %s2361_s23 }
 0x428   : > { %s3109_s24 = smov %s2467_s27  ;;  %24 = sbr.rel (!%p22_p2) target bundleno = 5 (0x5), region = 122 }
 0x42c   : > { %s3108_s23 = smov %s3105_s13 }
 0x42d   :  { %1911 = vsyncpa [#allocation3], 1 }
 0x42e   :  { %1913 = vsyncpa [#allocation3 + $0x1], 1 }

</bundles_post_ra>
